<compile_context>
chip_gen: v7x
topology: tpu7x:2x2x1
jax: 0.10.0
libtpu: 0.0.40
codegen_flags: <defaults>
</compile_context>

<pallas_src>
import functools

import jax
import jax.numpy as jnp
import numpy as np
from jax.experimental import pallas as pl
from jax.experimental.pallas import tpu as pltpu


# ----------------------------------------------------------------------------
# Fused Pallas kernel (nb images per grid step)
# ----------------------------------------------------------------------------
def _inception_b_res_kernel(
    x_ref,                       # (nb, H*W, Cin)                     f32
    w_stem_ref,                  # (Cin, [n1_linear]+b1+b2_n1)        bf16
    s_stem_ref, b_stem_ref,      # (1, same)                          f32
    w17_ref,                     # (7, b2_n1, b2_n1x7)  per-tap 1x7   bf16
    s17_ref, b17_ref,            # (1, b2_n1x7)                       f32
    w71_ref,                     # (7, b2_n1x7, b2_n7x1) per-tap 7x1  bf16
    s71_ref, b71_ref,            # (1, b2_n7x1)                       f32
    w_lin1_ref,                  # (b1, n1_linear)       conv_linear  bf16
    w_lin2_ref,                  # (b2_n7x1, n1_linear)  conv_linear  bf16
    o_ref,                       # (nb*H*W, n1_linear)                f32
    padw_ref,                    # VMEM scratch (nb*H, W+6, b2_n1)    halo in W
    padh_ref,                    # VMEM scratch (nb, H+6, W, b2_n1x7) halo in H
    *, H, W, b1, b2_n1, b2_n1x7, has_shortcut_conv):
  nb, HW, Cin = x_ref.shape
  R = nb * HW                         # rows handled this grid step
  n1_linear = o_ref.shape[-1]
  K, PAD = 7, 3
  bf16 = jnp.bfloat16

  x_f32 = x_ref[...].reshape(R, Cin)            # leading-dim merge only (free)

  # --- merged 1x1 stem: [shortcut? | branch1 | branch2-1x1] in one matmul ----
  stem = jnp.dot(x_f32.astype(bf16), w_stem_ref[...],
                 preferred_element_type=jnp.float32)
  stem = stem * s_stem_ref[...] + b_stem_ref[...]          # folded BN, f32
  if has_shortcut_conv:
    shortcut = stem[:, :n1_linear]                          # conv+BN, no ReLU
    out1 = jnp.maximum(stem[:, n1_linear:n1_linear + b1], 0.0)
    t2 = jnp.maximum(stem[:, n1_linear + b1:], 0.0)
  else:
    shortcut = x_f32                                        # identity residual
    out1 = jnp.maximum(stem[:, :b1], 0.0)
    t2 = jnp.maximum(stem[:, b1:], 0.0)

  # --- branch2: 1x7 conv, padding (0,3): W-halo scratch + 7 tap matmuls ------
  # Only the halo strips are zeroed; they are never touched by the interior
  # store.  (Zeroed every step: under megacore "parallel" sharding each core
  # has its own scratch, so a program_id==0 one-shot init would be unsafe.)
  padw_ref[:, :PAD, :] = jnp.zeros((nb * H, PAD, b2_n1), jnp.float32)
  padw_ref[:, PAD + W:, :] = jnp.zeros((nb * H, PAD, b2_n1), jnp.float32)
  padw_ref[:, PAD:PAD + W, :] = t2.reshape(nb * H, W, b2_n1)
  w17_all = w17_ref[...]
  acc = None
  for kw in range(K):
    tap = jnp.dot(padw_ref[:, kw:kw + W, :].reshape(R, b2_n1).astype(bf16),
                  w17_all[kw], preferred_element_type=jnp.float32)
    acc = tap if acc is None else acc + tap
  t3 = jnp.maximum(acc * s17_ref[...] + b17_ref[...], 0.0)

  # --- branch2: 7x1 conv, padding (3,0): H-halo scratch + 7 tap matmuls ------
  padh_ref[:, :PAD, :, :] = jnp.zeros((nb, PAD, W, b2_n1x7), jnp.float32)
  padh_ref[:, PAD + H:, :, :] = jnp.zeros((nb, PAD, W, b2_n1x7), jnp.float32)
  padh_ref[:, PAD:PAD + H, :, :] = t3.reshape(nb, H, W, b2_n1x7)
  w71_all = w71_ref[...]
  acc2 = None
  for kh in range(K):
    tap = jnp.dot(
        padh_ref[:, kh:kh + H, :, :].reshape(R, b2_n1x7).astype(bf16),
        w71_all[kh], preferred_element_type=jnp.float32)
    acc2 = tap if acc2 is None else acc2 + tap
  out2 = jnp.maximum(acc2 * s71_ref[...] + b71_ref[...], 0.0)

  # --- conv_linear as two accumulated dots (no lane concat) + residual -------
  lin = jnp.dot(out1.astype(bf16), w_lin1_ref[...],
                preferred_element_type=jnp.float32)
  lin = lin + jnp.dot(out2.astype(bf16), w_lin2_ref[...],
                      preferred_element_type=jnp.float32)
  o_ref[...] = jnp.maximum(lin + shortcut, 0.0).astype(o_ref.dtype)


def _pick_images_per_step(n, rows_per_image, target_rows=512):
  """Largest divisor of n giving <= target_rows rows/step and >=2 grid steps."""
  best = 1
  for d in range(1, n + 1):
    if n % d:
      continue
    if n >= 2 and n // d < 2:      # keep >=2 steps so both v7x TCs get work
      continue
    if d * rows_per_image <= target_rows:
      best = max(best, d)
  return best


# ----------------------------------------------------------------------------
# Wrapper: NCHW in / NCHW out (matches the PyTorch module)
# ----------------------------------------------------------------------------
def inception_b_res_forward(x_nchw, params):
  compute_dtype = jnp.bfloat16
  x_nhwc = jnp.transpose(x_nchw, (0, 2, 3, 1)).astype(jnp.float32)
  N, H, W, Cin = x_nhwc.shape
  x2 = x_nhwc.reshape(N, H * W, Cin)            # matmul-shaped rows per image

  w_b1, s_b1, bi_b1 = params["branch1"]
  w_b2a, s_b2a, bi_b2a = params["branch2_1x1"]
  w_b2b, s_b2b, bi_b2b = params["branch2_1x7"]              # HWIO (1,7,Ci,Co)
  w_b2c, s_b2c, bi_b2c = params["branch2_7x1"]              # HWIO (7,1,Ci,Co)
  w_lin = params["conv_linear"]                             # HWIO (1,1,Ci,Co)
  n1_linear = w_lin.shape[-1]

  b1 = w_b1.shape[-1]
  b2_n1 = w_b2a.shape[-1]
  b2_n1x7 = w_b2b.shape[-1]
  b2_n7x1 = w_b2c.shape[-1]

  has_shortcut_conv = params.get("shortcut") is not None
  if has_shortcut_conv:
    # Stem column order: [shortcut (wide, vreg-aligned) | branch1 | branch2].
    w_sc, s_sc, bi_sc = params["shortcut"]
    w_stem = jnp.concatenate([w_sc.reshape(Cin, n1_linear),
                              w_b1.reshape(Cin, b1),
                              w_b2a.reshape(Cin, b2_n1)], axis=1)
    s_stem = jnp.concatenate([s_sc, s_b1, s_b2a]).reshape(1, -1)
    b_stem = jnp.concatenate([bi_sc, bi_b1, bi_b2a]).reshape(1, -1)
  else:
    # Identity shortcut: residual is added directly in the kernel epilogue.
    assert Cin == n1_linear, "identity shortcut requires Cin == n1_linear"
    w_stem = jnp.concatenate([w_b1.reshape(Cin, b1),
                              w_b2a.reshape(Cin, b2_n1)], axis=1)
    s_stem = jnp.concatenate([s_b1, s_b2a]).reshape(1, -1)
    b_stem = jnp.concatenate([bi_b1, bi_b2a]).reshape(1, -1)

  # Per-tap weight layout for the separable convs (tap-major).
  w17 = w_b2b.reshape(7, b2_n1, b2_n1x7).astype(compute_dtype)
  w71 = w_b2c.reshape(7, b2_n1x7, b2_n7x1).astype(compute_dtype)
  w_lin2d = w_lin.reshape(b1 + b2_n7x1, n1_linear)
  w_lin1 = w_lin2d[:b1].astype(compute_dtype)               # reads out1
  w_lin2 = w_lin2d[b1:].astype(compute_dtype)               # reads out2

  weights = (w_stem.astype(compute_dtype),
             s_stem.astype(jnp.float32), b_stem.astype(jnp.float32),
             w17,
             s_b2b.reshape(1, b2_n1x7).astype(jnp.float32),
             bi_b2b.reshape(1, b2_n1x7).astype(jnp.float32),
             w71,
             s_b2c.reshape(1, b2_n7x1).astype(jnp.float32),
             bi_b2c.reshape(1, b2_n7x1).astype(jnp.float32),
             w_lin1, w_lin2)

  nb = _pick_images_per_step(N, H * W)
  grid = (N // nb,)

  def _const_spec(a):
    return pl.BlockSpec(a.shape, lambda n, _nd=a.ndim: (0,) * _nd)

  kernel = functools.partial(
      _inception_b_res_kernel, H=H, W=W, b1=b1, b2_n1=b2_n1,
      b2_n1x7=b2_n1x7, has_shortcut_conv=has_shortcut_conv)

  out2d = pl.pallas_call(
      kernel,
      out_shape=jax.ShapeDtypeStruct((N * H * W, n1_linear), jnp.float32),
      grid=grid,
      in_specs=[pl.BlockSpec((nb, H * W, Cin), lambda n: (n, 0, 0))]
               + [_const_spec(a) for a in weights],
      out_specs=pl.BlockSpec((nb * H * W, n1_linear), lambda n: (n, 0)),
      scratch_shapes=[pltpu.VMEM((nb * H, W + 6, b2_n1), jnp.float32),
                      pltpu.VMEM((nb, H + 6, W, b2_n1x7), jnp.float32)],
      compiler_params=pltpu.CompilerParams(
          dimension_semantics=("parallel",),
          vmem_limit_bytes=32 * 1024 * 1024),
  )(x2, *weights)

  out = out2d.reshape(N, H, W, n1_linear)
  return jnp.transpose(out, (0, 3, 1, 2))                   # NHWC -> NCHW


# ----------------------------------------------------------------------------
# Parameter init: BasicConv2d = conv(no bias) + BN(eval, folded) + ReLU
# ----------------------------------------------------------------------------
def make_basic_conv_params(key, cin, cout, k_h, k_w):
  kwt, kg, kb, km, kv = jax.random.split(key, 5)
  w = 0.1 * jax.random.normal(kwt, (k_h, k_w, cin, cout), jnp.float32)
  gamma = jax.random.uniform(kg, (cout,), jnp.float32, 0.5, 1.5)
  beta = 0.1 * jax.random.normal(kb, (cout,), jnp.float32)
  mean = 0.1 * jax.random.normal(km, (cout,), jnp.float32)
  var = jax.random.uniform(kv, (cout,), jnp.float32, 0.5, 1.5)
  scale = gamma / jnp.sqrt(var + 1e-5)
  bias = beta - mean * scale
  return w, scale, bias


# ----------------------------------------------------------------------------
# Pure-JAX f32 reference (faithful to the PyTorch module)
# ----------------------------------------------------------------------------
def _conv(x, w, padding):
  return jax.lax.conv_general_dilated(
      x, w, (1, 1), padding, dimension_numbers=("NHWC", "HWIO", "NHWC"))


def reference_forward(x_nchw, params):
  x = jnp.transpose(x_nchw, (0, 2, 3, 1))
  w_b1, s_b1, bi_b1 = params["branch1"]
  w_b2a, s_b2a, bi_b2a = params["branch2_1x1"]
  w_b2b, s_b2b, bi_b2b = params["branch2_1x7"]
  w_b2c, s_b2c, bi_b2c = params["branch2_7x1"]
  w_lin = params["conv_linear"]

  out1 = jnp.maximum(_conv(x, w_b1, [(0, 0), (0, 0)]) * s_b1 + bi_b1, 0.0)
  t2 = jnp.maximum(_conv(x, w_b2a, [(0, 0), (0, 0)]) * s_b2a + bi_b2a, 0.0)
  t3 = jnp.maximum(_conv(t2, w_b2b, [(0, 0), (3, 3)]) * s_b2b + bi_b2b, 0.0)
  out2 = jnp.maximum(_conv(t3, w_b2c, [(3, 3), (0, 0)]) * s_b2c + bi_b2c, 0.0)
  cat = jnp.concatenate([out1, out2], axis=-1)
  lin = _conv(cat, w_lin, [(0, 0), (0, 0)])
  if params.get("shortcut") is not None:
    w_sc, s_sc, bi_sc = params["shortcut"]
    sc = _conv(x, w_sc, [(0, 0), (0, 0)]) * s_sc + bi_sc
  else:
    sc = x
  y = jnp.maximum(lin + sc, 0.0)
  return jnp.transpose(y, (0, 3, 1, 2))


# ----------------------------------------------------------------------------
if __name__ == "__main__":
  def run_case(key, in_channels, b1, b2_n1, b2_n1x7, b2_n7x1, n1_linear,
               N, H, W, with_shortcut_conv):
    kx, k1, k2, k3, k4, k5, k6 = jax.random.split(key, 7)
    params = {
        "branch1": make_basic_conv_params(k1, in_channels, b1, 1, 1),
        "branch2_1x1": make_basic_conv_params(k2, in_channels, b2_n1, 1, 1),
        "branch2_1x7": make_basic_conv_params(k3, b2_n1, b2_n1x7, 1, 7),
        "branch2_7x1": make_basic_conv_params(k4, b2_n1x7, b2_n7x1, 7, 1),
        "conv_linear": 0.1 * jax.random.normal(
            k5, (1, 1, b1 + b2_n7x1, n1_linear), jnp.float32),
        "shortcut": (make_basic_conv_params(k6, in_channels, n1_linear, 1, 1)
                     if with_shortcut_conv else None),
    }
    x = jax.random.normal(kx, (N, in_channels, H, W), jnp.float32)   # NCHW

    out = jax.block_until_ready(jax.jit(inception_b_res_forward)(x, params))
    assert out.shape == (N, n1_linear, H, W), out.shape

    ref = jax.block_until_ready(reference_forward(x, params))
    # Tolerance reflects bf16 MXU operands vs the f32 reference.
    np.testing.assert_allclose(np.asarray(out), np.asarray(ref),
                               rtol=2e-2, atol=2e-2)

  root = jax.random.PRNGKey(0)
  k_a, k_b = jax.random.split(root)
  # Case 1: in_channels != n1_linear  -> 1x1-conv + BN shortcut path.
  run_case(k_a, 32, 16, 16, 16, 16, 128, 2, 8, 8, True)
  # Case 2: in_channels == n1_linear  -> identity shortcut added directly
  # in the epilogue (the common production configuration).
  run_case(k_b, 128, 32, 32, 32, 32, 128, 2, 8, 8, False)

  print("KERNEL_OK")
</pallas_src>

<mosaic_0001>
module attributes {stable_mosaic.version = 11 : i64} {
  func.func @_inception_b_res_kernel(%arg0: i32, %arg1: memref<1x64x32xf32, #tpu.memory_space<vmem>>, %arg2: memref<32x160xbf16, #tpu.memory_space<vmem>>, %arg3: memref<1x160xf32, #tpu.memory_space<vmem>>, %arg4: memref<1x160xf32, #tpu.memory_space<vmem>>, %arg5: memref<7x16x16xbf16, #tpu.memory_space<vmem>>, %arg6: memref<1x16xf32, #tpu.memory_space<vmem>>, %arg7: memref<1x16xf32, #tpu.memory_space<vmem>>, %arg8: memref<7x16x16xbf16, #tpu.memory_space<vmem>>, %arg9: memref<1x16xf32, #tpu.memory_space<vmem>>, %arg10: memref<1x16xf32, #tpu.memory_space<vmem>>, %arg11: memref<16x128xbf16, #tpu.memory_space<vmem>>, %arg12: memref<16x128xbf16, #tpu.memory_space<vmem>>, %arg13: memref<64x128xf32, #tpu.memory_space<vmem>>, %arg14: memref<8x14x16xf32, #tpu.memory_space<vmem>>, %arg15: memref<1x14x8x16xf32, #tpu.memory_space<vmem>>) attributes {dimension_semantics = [#tpu.dimension_semantics<parallel>], iteration_bounds = array<i64: 2>, scalar_prefetch = 0 : i64, scratch_operands = 2 : i64, tpu.core_type = #tpu.core_type<tc>, window_params = [{transform_indices = @transform_0, window_bounds = array<i64: 1, 64, 32>}, {pipeline_mode = #tpu.pipeline_mode<synchronous>, transform_indices = @transform_1, window_bounds = array<i64: 32, 160>}, {pipeline_mode = #tpu.pipeline_mode<synchronous>, transform_indices = @transform_2, window_bounds = array<i64: 1, 160>}, {pipeline_mode = #tpu.pipeline_mode<synchronous>, transform_indices = @transform_3, window_bounds = array<i64: 1, 160>}, {pipeline_mode = #tpu.pipeline_mode<synchronous>, transform_indices = @transform_4, window_bounds = array<i64: 7, 16, 16>}, {pipeline_mode = #tpu.pipeline_mode<synchronous>, transform_indices = @transform_5, window_bounds = array<i64: 1, 16>}, {pipeline_mode = #tpu.pipeline_mode<synchronous>, transform_indices = @transform_6, window_bounds = array<i64: 1, 16>}, {pipeline_mode = #tpu.pipeline_mode<synchronous>, transform_indices = @transform_7, window_bounds = array<i64: 7, 16, 16>}, {pipeline_mode = #tpu.pipeline_mode<synchronous>, transform_indices = @transform_8, window_bounds = array<i64: 1, 16>}, {pipeline_mode = #tpu.pipeline_mode<synchronous>, transform_indices = @transform_9, window_bounds = array<i64: 1, 16>}, {pipeline_mode = #tpu.pipeline_mode<synchronous>, transform_indices = @transform_10, window_bounds = array<i64: 16, 128>}, {pipeline_mode = #tpu.pipeline_mode<synchronous>, transform_indices = @transform_11, window_bounds = array<i64: 16, 128>}, {transform_indices = @transform_12, window_bounds = array<i64: 64, 128>}]} {
    %c0 = arith.constant 0 : index
    %c0_0 = arith.constant 0 : index
    %c0_1 = arith.constant 0 : index
    %0 = vector.load %arg1[%c0, %c0_0, %c0_1] : memref<1x64x32xf32, #tpu.memory_space<vmem>>, vector<1x64x32xf32>
    %1 = vector.shape_cast %0 : vector<1x64x32xf32> to vector<64x32xf32>
    %2 = arith.truncf %1 : vector<64x32xf32> to vector<64x32xbf16>
    %c0_2 = arith.constant 0 : index
    %c0_3 = arith.constant 0 : index
    %3 = vector.load %arg2[%c0_2, %c0_3] : memref<32x160xbf16, #tpu.memory_space<vmem>>, vector<32x160xbf16>
    %cst = arith.constant dense<0.000000e+00> : vector<64x160xf32>
    %4 = tpu.matmul %2, %3, %cst {dimension_numbers = #tpu.dot_dimension_numbers<[1], [0], [0], [1], [0, 0, 1, 1], [], []>} : vector<64x32xbf16>, vector<32x160xbf16>, vector<64x160xf32> -> vector<64x160xf32>
    %c0_4 = arith.constant 0 : index
    %c0_5 = arith.constant 0 : index
    %5 = vector.load %arg3[%c0_4, %c0_5] : memref<1x160xf32, #tpu.memory_space<vmem>>, vector<1x160xf32>
    %6 = vector.broadcast %5 : vector<1x160xf32> to vector<64x160xf32>
    %7 = arith.mulf %4, %6 : vector<64x160xf32>
    %c0_6 = arith.constant 0 : index
    %c0_7 = arith.constant 0 : index
    %8 = vector.load %arg4[%c0_6, %c0_7] : memref<1x160xf32, #tpu.memory_space<vmem>>, vector<1x160xf32>
    %9 = vector.broadcast %8 : vector<1x160xf32> to vector<64x160xf32>
    %10 = arith.addf %7, %9 : vector<64x160xf32>
    %11 = vector.extract_strided_slice %10 {offsets = [0, 0], sizes = [64, 128], strides = [1, 1]} : vector<64x160xf32> to vector<64x128xf32>
    %12 = vector.extract_strided_slice %10 {offsets = [0, 128], sizes = [64, 16], strides = [1, 1]} : vector<64x160xf32> to vector<64x16xf32>
    %cst_8 = arith.constant 0.000000e+00 : f32
    %13 = vector.broadcast %cst_8 : f32 to vector<64x16xf32>
    %14 = arith.maximumf %12, %13 : vector<64x16xf32>
    %15 = vector.extract_strided_slice %10 {offsets = [0, 144], sizes = [64, 16], strides = [1, 1]} : vector<64x160xf32> to vector<64x16xf32>
    %cst_9 = arith.constant 0.000000e+00 : f32
    %16 = vector.broadcast %cst_9 : f32 to vector<64x16xf32>
    %17 = arith.maximumf %15, %16 : vector<64x16xf32>
    %cst_10 = arith.constant 0.000000e+00 : f32
    %18 = vector.broadcast %cst_10 : f32 to vector<8x3x16xf32>
    %c0_11 = arith.constant 0 : index
    %c0_12 = arith.constant 0 : index
    %c0_13 = arith.constant 0 : index
    %19 = vector.load %arg14[%c0_11, %c0_12, %c0_13] : memref<8x14x16xf32, #tpu.memory_space<vmem>>, vector<8x3x16xf32>
    tpu.vector_store %arg14[%c0_11, %c0_12, %c0_13], %18 {strides = array<i32>} : memref<8x14x16xf32, #tpu.memory_space<vmem>>, vector<8x3x16xf32>,
    %cst_14 = arith.constant 0.000000e+00 : f32
    %20 = vector.broadcast %cst_14 : f32 to vector<8x3x16xf32>
    %c0_15 = arith.constant 0 : index
    %c11 = arith.constant 11 : index
    %c0_16 = arith.constant 0 : index
    %21 = vector.load %arg14[%c0_15, %c11, %c0_16] : memref<8x14x16xf32, #tpu.memory_space<vmem>>, vector<8x3x16xf32>
    tpu.vector_store %arg14[%c0_15, %c11, %c0_16], %20 {strides = array<i32>} : memref<8x14x16xf32, #tpu.memory_space<vmem>>, vector<8x3x16xf32>,
    %22 = vector.shape_cast %17 : vector<64x16xf32> to vector<8x8x16xf32>
    %c0_17 = arith.constant 0 : index
    %c3 = arith.constant 3 : index
    %c0_18 = arith.constant 0 : index
    %23 = vector.load %arg14[%c0_17, %c3, %c0_18] : memref<8x14x16xf32, #tpu.memory_space<vmem>>, vector<8x8x16xf32>
    tpu.vector_store %arg14[%c0_17, %c3, %c0_18], %22 {strides = array<i32>} : memref<8x14x16xf32, #tpu.memory_space<vmem>>, vector<8x8x16xf32>,
    %c0_19 = arith.constant 0 : index
    %c0_20 = arith.constant 0 : index
    %c0_21 = arith.constant 0 : index
    %24 = vector.load %arg5[%c0_19, %c0_20, %c0_21] : memref<7x16x16xbf16, #tpu.memory_space<vmem>>, vector<7x16x16xbf16>
    %c0_22 = arith.constant 0 : index
    %c0_23 = arith.constant 0 : index
    %c0_24 = arith.constant 0 : index
    %25 = vector.load %arg14[%c0_22, %c0_23, %c0_24] : memref<8x14x16xf32, #tpu.memory_space<vmem>>, vector<8x8x16xf32>
    %26 = vector.shape_cast %25 : vector<8x8x16xf32> to vector<64x16xf32>
    %27 = arith.truncf %26 : vector<64x16xf32> to vector<64x16xbf16>
    %28 = vector.extract_strided_slice %24 {offsets = [0, 0, 0], sizes = [1, 16, 16], strides = [1, 1, 1]} : vector<7x16x16xbf16> to vector<1x16x16xbf16>
    %29 = vector.shape_cast %28 : vector<1x16x16xbf16> to vector<16x16xbf16>
    %cst_25 = arith.constant dense<0.000000e+00> : vector<64x16xf32>
    %30 = tpu.matmul %27, %29, %cst_25 {dimension_numbers = #tpu.dot_dimension_numbers<[1], [0], [0], [1], [0, 0, 1, 1], [], []>} : vector<64x16xbf16>, vector<16x16xbf16>, vector<64x16xf32> -> vector<64x16xf32>
    %c0_26 = arith.constant 0 : index
    %c1 = arith.constant 1 : index
    %c0_27 = arith.constant 0 : index
    %31 = vector.load %arg14[%c0_26, %c1, %c0_27] : memref<8x14x16xf32, #tpu.memory_space<vmem>>, vector<8x8x16xf32>
    %32 = vector.shape_cast %31 : vector<8x8x16xf32> to vector<64x16xf32>
    %33 = arith.truncf %32 : vector<64x16xf32> to vector<64x16xbf16>
    %34 = vector.extract_strided_slice %24 {offsets = [1, 0, 0], sizes = [1, 16, 16], strides = [1, 1, 1]} : vector<7x16x16xbf16> to vector<1x16x16xbf16>
    %35 = vector.shape_cast %34 : vector<1x16x16xbf16> to vector<16x16xbf16>
    %cst_28 = arith.constant dense<0.000000e+00> : vector<64x16xf32>
    %36 = tpu.matmul %33, %35, %cst_28 {dimension_numbers = #tpu.dot_dimension_numbers<[1], [0], [0], [1], [0, 0, 1, 1], [], []>} : vector<64x16xbf16>, vector<16x16xbf16>, vector<64x16xf32> -> vector<64x16xf32>
    %37 = arith.addf %30, %36 : vector<64x16xf32>
    %c0_29 = arith.constant 0 : index
    %c2 = arith.constant 2 : index
    %c0_30 = arith.constant 0 : index
    %38 = vector.load %arg14[%c0_29, %c2, %c0_30] : memref<8x14x16xf32, #tpu.memory_space<vmem>>, vector<8x8x16xf32>
    %39 = vector.shape_cast %38 : vector<8x8x16xf32> to vector<64x16xf32>
    %40 = arith.truncf %39 : vector<64x16xf32> to vector<64x16xbf16>
    %41 = vector.extract_strided_slice %24 {offsets = [2, 0, 0], sizes = [1, 16, 16], strides = [1, 1, 1]} : vector<7x16x16xbf16> to vector<1x16x16xbf16>
    %42 = vector.shape_cast %41 : vector<1x16x16xbf16> to vector<16x16xbf16>
    %cst_31 = arith.constant dense<0.000000e+00> : vector<64x16xf32>
    %43 = tpu.matmul %40, %42, %cst_31 {dimension_numbers = #tpu.dot_dimension_numbers<[1], [0], [0], [1], [0, 0, 1, 1], [], []>} : vector<64x16xbf16>, vector<16x16xbf16>, vector<64x16xf32> -> vector<64x16xf32>
    %44 = arith.addf %37, %43 : vector<64x16xf32>
    %c0_32 = arith.constant 0 : index
    %c3_33 = arith.constant 3 : index
    %c0_34 = arith.constant 0 : index
    %45 = vector.load %arg14[%c0_32, %c3_33, %c0_34] : memref<8x14x16xf32, #tpu.memory_space<vmem>>, vector<8x8x16xf32>
    %46 = vector.shape_cast %45 : vector<8x8x16xf32> to vector<64x16xf32>
    %47 = arith.truncf %46 : vector<64x16xf32> to vector<64x16xbf16>
    %48 = vector.extract_strided_slice %24 {offsets = [3, 0, 0], sizes = [1, 16, 16], strides = [1, 1, 1]} : vector<7x16x16xbf16> to vector<1x16x16xbf16>
    %49 = vector.shape_cast %48 : vector<1x16x16xbf16> to vector<16x16xbf16>
    %cst_35 = arith.constant dense<0.000000e+00> : vector<64x16xf32>
    %50 = tpu.matmul %47, %49, %cst_35 {dimension_numbers = #tpu.dot_dimension_numbers<[1], [0], [0], [1], [0, 0, 1, 1], [], []>} : vector<64x16xbf16>, vector<16x16xbf16>, vector<64x16xf32> -> vector<64x16xf32>
    %51 = arith.addf %44, %50 : vector<64x16xf32>
    %c0_36 = arith.constant 0 : index
    %c4 = arith.constant 4 : index
    %c0_37 = arith.constant 0 : index
    %52 = vector.load %arg14[%c0_36, %c4, %c0_37] : memref<8x14x16xf32, #tpu.memory_space<vmem>>, vector<8x8x16xf32>
    %53 = vector.shape_cast %52 : vector<8x8x16xf32> to vector<64x16xf32>
    %54 = arith.truncf %53 : vector<64x16xf32> to vector<64x16xbf16>
    %55 = vector.extract_strided_slice %24 {offsets = [4, 0, 0], sizes = [1, 16, 16], strides = [1, 1, 1]} : vector<7x16x16xbf16> to vector<1x16x16xbf16>
    %56 = vector.shape_cast %55 : vector<1x16x16xbf16> to vector<16x16xbf16>
    %cst_38 = arith.constant dense<0.000000e+00> : vector<64x16xf32>
    %57 = tpu.matmul %54, %56, %cst_38 {dimension_numbers = #tpu.dot_dimension_numbers<[1], [0], [0], [1], [0, 0, 1, 1], [], []>} : vector<64x16xbf16>, vector<16x16xbf16>, vector<64x16xf32> -> vector<64x16xf32>
    %58 = arith.addf %51, %57 : vector<64x16xf32>
    %c0_39 = arith.constant 0 : index
    %c5 = arith.constant 5 : index
    %c0_40 = arith.constant 0 : index
    %59 = vector.load %arg14[%c0_39, %c5, %c0_40] : memref<8x14x16xf32, #tpu.memory_space<vmem>>, vector<8x8x16xf32>
    %60 = vector.shape_cast %59 : vector<8x8x16xf32> to vector<64x16xf32>
    %61 = arith.truncf %60 : vector<64x16xf32> to vector<64x16xbf16>
    %62 = vector.extract_strided_slice %24 {offsets = [5, 0, 0], sizes = [1, 16, 16], strides = [1, 1, 1]} : vector<7x16x16xbf16> to vector<1x16x16xbf16>
    %63 = vector.shape_cast %62 : vector<1x16x16xbf16> to vector<16x16xbf16>
    %cst_41 = arith.constant dense<0.000000e+00> : vector<64x16xf32>
    %64 = tpu.matmul %61, %63, %cst_41 {dimension_numbers = #tpu.dot_dimension_numbers<[1], [0], [0], [1], [0, 0, 1, 1], [], []>} : vector<64x16xbf16>, vector<16x16xbf16>, vector<64x16xf32> -> vector<64x16xf32>
    %65 = arith.addf %58, %64 : vector<64x16xf32>
    %c0_42 = arith.constant 0 : index
    %c6 = arith.constant 6 : index
    %c0_43 = arith.constant 0 : index
    %66 = vector.load %arg14[%c0_42, %c6, %c0_43] : memref<8x14x16xf32, #tpu.memory_space<vmem>>, vector<8x8x16xf32>
    %67 = vector.shape_cast %66 : vector<8x8x16xf32> to vector<64x16xf32>
    %68 = arith.truncf %67 : vector<64x16xf32> to vector<64x16xbf16>
    %69 = vector.extract_strided_slice %24 {offsets = [6, 0, 0], sizes = [1, 16, 16], strides = [1, 1, 1]} : vector<7x16x16xbf16> to vector<1x16x16xbf16>
    %70 = vector.shape_cast %69 : vector<1x16x16xbf16> to vector<16x16xbf16>
    %cst_44 = arith.constant dense<0.000000e+00> : vector<64x16xf32>
    %71 = tpu.matmul %68, %70, %cst_44 {dimension_numbers = #tpu.dot_dimension_numbers<[1], [0], [0], [1], [0, 0, 1, 1], [], []>} : vector<64x16xbf16>, vector<16x16xbf16>, vector<64x16xf32> -> vector<64x16xf32>
    %72 = arith.addf %65, %71 : vector<64x16xf32>
    %c0_45 = arith.constant 0 : index
    %c0_46 = arith.constant 0 : index
    %73 = vector.load %arg6[%c0_45, %c0_46] : memref<1x16xf32, #tpu.memory_space<vmem>>, vector<1x16xf32>
    %74 = vector.broadcast %73 : vector<1x16xf32> to vector<64x16xf32>
    %75 = arith.mulf %72, %74 : vector<64x16xf32>
    %c0_47 = arith.constant 0 : index
    %c0_48 = arith.constant 0 : index
    %76 = vector.load %arg7[%c0_47, %c0_48] : memref<1x16xf32, #tpu.memory_space<vmem>>, vector<1x16xf32>
    %77 = vector.broadcast %76 : vector<1x16xf32> to vector<64x16xf32>
    %78 = arith.addf %75, %77 : vector<64x16xf32>
    %cst_49 = arith.constant 0.000000e+00 : f32
    %79 = vector.broadcast %cst_49 : f32 to vector<64x16xf32>
    %80 = arith.maximumf %78, %79 : vector<64x16xf32>
    %cst_50 = arith.constant 0.000000e+00 : f32
    %81 = vector.broadcast %cst_50 : f32 to vector<1x3x8x16xf32>
    %c0_51 = arith.constant 0 : index
    %c0_52 = arith.constant 0 : index
    %c0_53 = arith.constant 0 : index
    %c0_54 = arith.constant 0 : index
    %82 = vector.load %arg15[%c0_51, %c0_52, %c0_53, %c0_54] : memref<1x14x8x16xf32, #tpu.memory_space<vmem>>, vector<1x3x8x16xf32>
    tpu.vector_store %arg15[%c0_51, %c0_52, %c0_53, %c0_54], %81 {strides = array<i32>} : memref<1x14x8x16xf32, #tpu.memory_space<vmem>>, vector<1x3x8x16xf32>,
    %cst_55 = arith.constant 0.000000e+00 : f32
    %83 = vector.broadcast %cst_55 : f32 to vector<1x3x8x16xf32>
    %c0_56 = arith.constant 0 : index
    %c11_57 = arith.constant 11 : index
    %c0_58 = arith.constant 0 : index
    %c0_59 = arith.constant 0 : index
    %84 = vector.load %arg15[%c0_56, %c11_57, %c0_58, %c0_59] : memref<1x14x8x16xf32, #tpu.memory_space<vmem>>, vector<1x3x8x16xf32>
    tpu.vector_store %arg15[%c0_56, %c11_57, %c0_58, %c0_59], %83 {strides = array<i32>} : memref<1x14x8x16xf32, #tpu.memory_space<vmem>>, vector<1x3x8x16xf32>,
    %85 = vector.shape_cast %80 : vector<64x16xf32> to vector<1x8x8x16xf32>
    %c0_60 = arith.constant 0 : index
    %c3_61 = arith.constant 3 : index
    %c0_62 = arith.constant 0 : index
    %c0_63 = arith.constant 0 : index
    %86 = vector.load %arg15[%c0_60, %c3_61, %c0_62, %c0_63] : memref<1x14x8x16xf32, #tpu.memory_space<vmem>>, vector<1x8x8x16xf32>
    tpu.vector_store %arg15[%c0_60, %c3_61, %c0_62, %c0_63], %85 {strides = array<i32>} : memref<1x14x8x16xf32, #tpu.memory_space<vmem>>, vector<1x8x8x16xf32>,
    %c0_64 = arith.constant 0 : index
    %c0_65 = arith.constant 0 : index
    %c0_66 = arith.constant 0 : index
    %87 = vector.load %arg8[%c0_64, %c0_65, %c0_66] : memref<7x16x16xbf16, #tpu.memory_space<vmem>>, vector<7x16x16xbf16>
    %c0_67 = arith.constant 0 : index
    %c0_68 = arith.constant 0 : index
    %c0_69 = arith.constant 0 : index
    %c0_70 = arith.constant 0 : index
    %88 = vector.load %arg15[%c0_67, %c0_68, %c0_69, %c0_70] : memref<1x14x8x16xf32, #tpu.memory_space<vmem>>, vector<1x8x8x16xf32>
    %89 = vector.shape_cast %88 : vector<1x8x8x16xf32> to vector<64x16xf32>
    %90 = arith.truncf %89 : vector<64x16xf32> to vector<64x16xbf16>
    %91 = vector.extract_strided_slice %87 {offsets = [0, 0, 0], sizes = [1, 16, 16], strides = [1, 1, 1]} : vector<7x16x16xbf16> to vector<1x16x16xbf16>
    %92 = vector.shape_cast %91 : vector<1x16x16xbf16> to vector<16x16xbf16>
    %cst_71 = arith.constant dense<0.000000e+00> : vector<64x16xf32>
    %93 = tpu.matmul %90, %92, %cst_71 {dimension_numbers = #tpu.dot_dimension_numbers<[1], [0], [0], [1], [0, 0, 1, 1], [], []>} : vector<64x16xbf16>, vector<16x16xbf16>, vector<64x16xf32> -> vector<64x16xf32>
    %c0_72 = arith.constant 0 : index
    %c1_73 = arith.constant 1 : index
    %c0_74 = arith.constant 0 : index
    %c0_75 = arith.constant 0 : index
    %94 = vector.load %arg15[%c0_72, %c1_73, %c0_74, %c0_75] : memref<1x14x8x16xf32, #tpu.memory_space<vmem>>, vector<1x8x8x16xf32>
    %95 = vector.shape_cast %94 : vector<1x8x8x16xf32> to vector<64x16xf32>
    %96 = arith.truncf %95 : vector<64x16xf32> to vector<64x16xbf16>
    %97 = vector.extract_strided_slice %87 {offsets = [1, 0, 0], sizes = [1, 16, 16], strides = [1, 1, 1]} : vector<7x16x16xbf16> to vector<1x16x16xbf16>
    %98 = vector.shape_cast %97 : vector<1x16x16xbf16> to vector<16x16xbf16>
    %cst_76 = arith.constant dense<0.000000e+00> : vector<64x16xf32>
    %99 = tpu.matmul %96, %98, %cst_76 {dimension_numbers = #tpu.dot_dimension_numbers<[1], [0], [0], [1], [0, 0, 1, 1], [], []>} : vector<64x16xbf16>, vector<16x16xbf16>, vector<64x16xf32> -> vector<64x16xf32>
    %100 = arith.addf %93, %99 : vector<64x16xf32>
    %c0_77 = arith.constant 0 : index
    %c2_78 = arith.constant 2 : index
    %c0_79 = arith.constant 0 : index
    %c0_80 = arith.constant 0 : index
    %101 = vector.load %arg15[%c0_77, %c2_78, %c0_79, %c0_80] : memref<1x14x8x16xf32, #tpu.memory_space<vmem>>, vector<1x8x8x16xf32>
    %102 = vector.shape_cast %101 : vector<1x8x8x16xf32> to vector<64x16xf32>
    %103 = arith.truncf %102 : vector<64x16xf32> to vector<64x16xbf16>
    %104 = vector.extract_strided_slice %87 {offsets = [2, 0, 0], sizes = [1, 16, 16], strides = [1, 1, 1]} : vector<7x16x16xbf16> to vector<1x16x16xbf16>
    %105 = vector.shape_cast %104 : vector<1x16x16xbf16> to vector<16x16xbf16>
    %cst_81 = arith.constant dense<0.000000e+00> : vector<64x16xf32>
    %106 = tpu.matmul %103, %105, %cst_81 {dimension_numbers = #tpu.dot_dimension_numbers<[1], [0], [0], [1], [0, 0, 1, 1], [], []>} : vector<64x16xbf16>, vector<16x16xbf16>, vector<64x16xf32> -> vector<64x16xf32>
    %107 = arith.addf %100, %106 : vector<64x16xf32>
    %c0_82 = arith.constant 0 : index
    %c3_83 = arith.constant 3 : index
    %c0_84 = arith.constant 0 : index
    %c0_85 = arith.constant 0 : index
    %108 = vector.load %arg15[%c0_82, %c3_83, %c0_84, %c0_85] : memref<1x14x8x16xf32, #tpu.memory_space<vmem>>, vector<1x8x8x16xf32>
    %109 = vector.shape_cast %108 : vector<1x8x8x16xf32> to vector<64x16xf32>
    %110 = arith.truncf %109 : vector<64x16xf32> to vector<64x16xbf16>
    %111 = vector.extract_strided_slice %87 {offsets = [3, 0, 0], sizes = [1, 16, 16], strides = [1, 1, 1]} : vector<7x16x16xbf16> to vector<1x16x16xbf16>
    %112 = vector.shape_cast %111 : vector<1x16x16xbf16> to vector<16x16xbf16>
    %cst_86 = arith.constant dense<0.000000e+00> : vector<64x16xf32>
    %113 = tpu.matmul %110, %112, %cst_86 {dimension_numbers = #tpu.dot_dimension_numbers<[1], [0], [0], [1], [0, 0, 1, 1], [], []>} : vector<64x16xbf16>, vector<16x16xbf16>, vector<64x16xf32> -> vector<64x16xf32>
    %114 = arith.addf %107, %113 : vector<64x16xf32>
    %c0_87 = arith.constant 0 : index
    %c4_88 = arith.constant 4 : index
    %c0_89 = arith.constant 0 : index
    %c0_90 = arith.constant 0 : index
    %115 = vector.load %arg15[%c0_87, %c4_88, %c0_89, %c0_90] : memref<1x14x8x16xf32, #tpu.memory_space<vmem>>, vector<1x8x8x16xf32>
    %116 = vector.shape_cast %115 : vector<1x8x8x16xf32> to vector<64x16xf32>
    %117 = arith.truncf %116 : vector<64x16xf32> to vector<64x16xbf16>
    %118 = vector.extract_strided_slice %87 {offsets = [4, 0, 0], sizes = [1, 16, 16], strides = [1, 1, 1]} : vector<7x16x16xbf16> to vector<1x16x16xbf16>
    %119 = vector.shape_cast %118 : vector<1x16x16xbf16> to vector<16x16xbf16>
    %cst_91 = arith.constant dense<0.000000e+00> : vector<64x16xf32>
    %120 = tpu.matmul %117, %119, %cst_91 {dimension_numbers = #tpu.dot_dimension_numbers<[1], [0], [0], [1], [0, 0, 1, 1], [], []>} : vector<64x16xbf16>, vector<16x16xbf16>, vector<64x16xf32> -> vector<64x16xf32>
    %121 = arith.addf %114, %120 : vector<64x16xf32>
    %c0_92 = arith.constant 0 : index
    %c5_93 = arith.constant 5 : index
    %c0_94 = arith.constant 0 : index
    %c0_95 = arith.constant 0 : index
    %122 = vector.load %arg15[%c0_92, %c5_93, %c0_94, %c0_95] : memref<1x14x8x16xf32, #tpu.memory_space<vmem>>, vector<1x8x8x16xf32>
    %123 = vector.shape_cast %122 : vector<1x8x8x16xf32> to vector<64x16xf32>
    %124 = arith.truncf %123 : vector<64x16xf32> to vector<64x16xbf16>
    %125 = vector.extract_strided_slice %87 {offsets = [5, 0, 0], sizes = [1, 16, 16], strides = [1, 1, 1]} : vector<7x16x16xbf16> to vector<1x16x16xbf16>
    %126 = vector.shape_cast %125 : vector<1x16x16xbf16> to vector<16x16xbf16>
    %cst_96 = arith.constant dense<0.000000e+00> : vector<64x16xf32>
    %127 = tpu.matmul %124, %126, %cst_96 {dimension_numbers = #tpu.dot_dimension_numbers<[1], [0], [0], [1], [0, 0, 1, 1], [], []>} : vector<64x16xbf16>, vector<16x16xbf16>, vector<64x16xf32> -> vector<64x16xf32>
    %128 = arith.addf %121, %127 : vector<64x16xf32>
    %c0_97 = arith.constant 0 : index
    %c6_98 = arith.constant 6 : index
    %c0_99 = arith.constant 0 : index
    %c0_100 = arith.constant 0 : index
    %129 = vector.load %arg15[%c0_97, %c6_98, %c0_99, %c0_100] : memref<1x14x8x16xf32, #tpu.memory_space<vmem>>, vector<1x8x8x16xf32>
    %130 = vector.shape_cast %129 : vector<1x8x8x16xf32> to vector<64x16xf32>
    %131 = arith.truncf %130 : vector<64x16xf32> to vector<64x16xbf16>
    %132 = vector.extract_strided_slice %87 {offsets = [6, 0, 0], sizes = [1, 16, 16], strides = [1, 1, 1]} : vector<7x16x16xbf16> to vector<1x16x16xbf16>
    %133 = vector.shape_cast %132 : vector<1x16x16xbf16> to vector<16x16xbf16>
    %cst_101 = arith.constant dense<0.000000e+00> : vector<64x16xf32>
    %134 = tpu.matmul %131, %133, %cst_101 {dimension_numbers = #tpu.dot_dimension_numbers<[1], [0], [0], [1], [0, 0, 1, 1], [], []>} : vector<64x16xbf16>, vector<16x16xbf16>, vector<64x16xf32> -> vector<64x16xf32>
    %135 = arith.addf %128, %134 : vector<64x16xf32>
    %c0_102 = arith.constant 0 : index
    %c0_103 = arith.constant 0 : index
    %136 = vector.load %arg9[%c0_102, %c0_103] : memref<1x16xf32, #tpu.memory_space<vmem>>, vector<1x16xf32>
    %137 = vector.broadcast %136 : vector<1x16xf32> to vector<64x16xf32>
    %138 = arith.mulf %135, %137 : vector<64x16xf32>
    %c0_104 = arith.constant 0 : index
    %c0_105 = arith.constant 0 : index
    %139 = vector.load %arg10[%c0_104, %c0_105] : memref<1x16xf32, #tpu.memory_space<vmem>>, vector<1x16xf32>
    %140 = vector.broadcast %139 : vector<1x16xf32> to vector<64x16xf32>
    %141 = arith.addf %138, %140 : vector<64x16xf32>
    %cst_106 = arith.constant 0.000000e+00 : f32
    %142 = vector.broadcast %cst_106 : f32 to vector<64x16xf32>
    %143 = arith.maximumf %141, %142 : vector<64x16xf32>
    %144 = arith.truncf %14 : vector<64x16xf32> to vector<64x16xbf16>
    %c0_107 = arith.constant 0 : index
    %c0_108 = arith.constant 0 : index
    %145 = vector.load %arg11[%c0_107, %c0_108] : memref<16x128xbf16, #tpu.memory_space<vmem>>, vector<16x128xbf16>
    %cst_109 = arith.constant dense<0.000000e+00> : vector<64x128xf32>
    %146 = tpu.matmul %144, %145, %cst_109 {dimension_numbers = #tpu.dot_dimension_numbers<[1], [0], [0], [1], [0, 0, 1, 1], [], []>} : vector<64x16xbf16>, vector<16x128xbf16>, vector<64x128xf32> -> vector<64x128xf32>
    %147 = arith.truncf %143 : vector<64x16xf32> to vector<64x16xbf16>
    %c0_110 = arith.constant 0 : index
    %c0_111 = arith.constant 0 : index
    %148 = vector.load %arg12[%c0_110, %c0_111] : memref<16x128xbf16, #tpu.memory_space<vmem>>, vector<16x128xbf16>
    %cst_112 = arith.constant dense<0.000000e+00> : vector<64x128xf32>
    %149 = tpu.matmul %147, %148, %cst_112 {dimension_numbers = #tpu.dot_dimension_numbers<[1], [0], [0], [1], [0, 0, 1, 1], [], []>} : vector<64x16xbf16>, vector<16x128xbf16>, vector<64x128xf32> -> vector<64x128xf32>
    %150 = arith.addf %146, %149 : vector<64x128xf32>
    %151 = arith.addf %150, %11 : vector<64x128xf32>
    %cst_113 = arith.constant 0.000000e+00 : f32
    %152 = vector.broadcast %cst_113 : f32 to vector<64x128xf32>
    %153 = arith.maximumf %151, %152 : vector<64x128xf32>
    %c0_114 = arith.constant 0 : index
    %c0_115 = arith.constant 0 : index
    %154 = vector.load %arg13[%c0_114, %c0_115] : memref<64x128xf32, #tpu.memory_space<vmem>>, vector<64x128xf32>
    tpu.vector_store %arg13[%c0_114, %c0_115], %153 {strides = array<i32>} : memref<64x128xf32, #tpu.memory_space<vmem>>, vector<64x128xf32>,
    return
  }
  func.func @transform_0(%arg0: i32) -> (i32, i32, i32) {
    %c0_i32 = arith.constant 0 : i32
    %c0_i32_0 = arith.constant 0 : i32
    %c0_i32_1 = arith.constant 0 : i32
    return %arg0, %c0_i32, %c0_i32_0 : i32, i32, i32
  }
  func.func @transform_1(%arg0: i32) -> (i32, i32) {
    %c0_i32 = arith.constant 0 : i32
    %c0_i32_0 = arith.constant 0 : i32
    %c0_i32_1 = arith.constant 0 : i32
    return %c0_i32, %c0_i32_0 : i32, i32
  }
  func.func @transform_2(%arg0: i32) -> (i32, i32) {
    %c0_i32 = arith.constant 0 : i32
    %c0_i32_0 = arith.constant 0 : i32
    %c0_i32_1 = arith.constant 0 : i32
    return %c0_i32, %c0_i32_0 : i32, i32
  }
  func.func @transform_3(%arg0: i32) -> (i32, i32) {
    %c0_i32 = arith.constant 0 : i32
    %c0_i32_0 = arith.constant 0 : i32
    %c0_i32_1 = arith.constant 0 : i32
    return %c0_i32, %c0_i32_0 : i32, i32
  }
  func.func @transform_4(%arg0: i32) -> (i32, i32, i32) {
    %c0_i32 = arith.constant 0 : i32
    %c0_i32_0 = arith.constant 0 : i32
    %c0_i32_1 = arith.constant 0 : i32
    %c0_i32_2 = arith.constant 0 : i32
    return %c0_i32, %c0_i32_0, %c0_i32_1 : i32, i32, i32
  }
  func.func @transform_5(%arg0: i32) -> (i32, i32) {
    %c0_i32 = arith.constant 0 : i32
    %c0_i32_0 = arith.constant 0 : i32
    %c0_i32_1 = arith.constant 0 : i32
    return %c0_i32, %c0_i32_0 : i32, i32
  }
  func.func @transform_6(%arg0: i32) -> (i32, i32) {
    %c0_i32 = arith.constant 0 : i32
    %c0_i32_0 = arith.constant 0 : i32
    %c0_i32_1 = arith.constant 0 : i32
    return %c0_i32, %c0_i32_0 : i32, i32
  }
  func.func @transform_7(%arg0: i32) -> (i32, i32, i32) {
    %c0_i32 = arith.constant 0 : i32
    %c0_i32_0 = arith.constant 0 : i32
    %c0_i32_1 = arith.constant 0 : i32
    %c0_i32_2 = arith.constant 0 : i32
    return %c0_i32, %c0_i32_0, %c0_i32_1 : i32, i32, i32
  }
  func.func @transform_8(%arg0: i32) -> (i32, i32) {
    %c0_i32 = arith.constant 0 : i32
    %c0_i32_0 = arith.constant 0 : i32
    %c0_i32_1 = arith.constant 0 : i32
    return %c0_i32, %c0_i32_0 : i32, i32
  }
  func.func @transform_9(%arg0: i32) -> (i32, i32) {
    %c0_i32 = arith.constant 0 : i32
    %c0_i32_0 = arith.constant 0 : i32
    %c0_i32_1 = arith.constant 0 : i32
    return %c0_i32, %c0_i32_0 : i32, i32
  }
  func.func @transform_10(%arg0: i32) -> (i32, i32) {
    %c0_i32 = arith.constant 0 : i32
    %c0_i32_0 = arith.constant 0 : i32
    %c0_i32_1 = arith.constant 0 : i32
    return %c0_i32, %c0_i32_0 : i32, i32
  }
  func.func @transform_11(%arg0: i32) -> (i32, i32) {
    %c0_i32 = arith.constant 0 : i32
    %c0_i32_0 = arith.constant 0 : i32
    %c0_i32_1 = arith.constant 0 : i32
    return %c0_i32, %c0_i32_0 : i32, i32
  }
  func.func @transform_12(%arg0: i32) -> (i32, i32) {
    %c0_i32 = arith.constant 0 : i32
    %c0_i32_0 = arith.constant 0 : i32
    return %arg0, %c0_i32 : i32, i32
  }
}

</mosaic_0001>

<bundles_post_ra>
// kernel: inception_b_res_forward.1
= control target key start
LH: loop header
LB: loop body
LE: loop exit
PB: predicated region body
PF: predicated region fallthrough
CT: control target
= control target key end

     0   :  { %17 = vsyncpa [#allocation5], 0  ;;  %s3505_s0 = inlined_call_operand.vmem [shape: f32[2,64,32], index: 0, kind: input, shape index: {}]   ;;  %s3506_s1 = inlined_call_operand.vmem [shape: bf16[32,160], index: 1, kind: input, shape index: {}]   ;;  %s3507_s2 = inlined_call_operand.vmem [shape: f32[1,160], index: 2, kind: input, shape index: {}]   ;;  %s3508_s3 = inlined_call_operand.vmem [shape: f32[1,160], index: 3, kind: input, shape index: {}]   ;;  %s3509_s4 = inlined_call_operand.vmem [shape: bf16[7,16,16], index: 4, kind: input, shape index: {}]   ;;  %s3510_s5 = inlined_call_operand.vmem [shape: f32[1,16], index: 5, kind: input, shape index: {}]   ;;  %s3511_s6 = inlined_call_operand.vmem [shape: f32[1,16], index: 6, kind: input, shape index: {}]   ;;  %s3512_s7 = inlined_call_operand.vmem [shape: bf16[7,16,16], index: 7, kind: input, shape index: {}]   ;;  %s3513_s8 = inlined_call_operand.vmem [shape: f32[1,16], index: 8, kind: input, shape index: {}]   ;;  %s3514_s9 = inlined_call_operand.vmem [shape: f32[1,16], index: 9, kind: input, shape index: {}]   ;;  %s3515_s10 = inlined_call_operand.vmem [shape: bf16[16,128], index: 10, kind: input, shape index: {}]   ;;  %s3516_s11 = inlined_call_operand.vmem [shape: bf16[16,128], index: 11, kind: input, shape index: {}]   ;;  %s3517_s12 = inlined_call_operand.hbm [shape: f32[128,128], index: 12, kind: output, shape index: {}]  }
   0x1   :  { %19 = vsyncpa [#allocation5 + $0x1], 0  ;;  %s3122_s21 = smov 0   ;;  %s3124_s22 = smov 0  }
   0x2   :  { %s3126_s23 = smov 0   ;;  %s3128_s24 = smov 0  }
   0x3 LB: > { %s3143_s25 = sadd.s32 4294967295, %s3049_s24   ;;  %s2471_s26 = sadd.s32 4294967294, %s3049_s24   ;;  %s3049_s24 = sphi %s3128_s24, %s3525_s24   ;;  %s3045_s23 = sphi %s3126_s23, %s3524_s23   ;;  %s3041_s22 = sphi %s3124_s22, %s3523_s22   ;;  %s3037_s21 = sphi %s3122_s21, %s3522_s21  }
   0x4   : > { %s3147_s27 = sadd.s32 1, %s3049_s24   ;;  %s289_s28 = sadd.s32 1, %s3045_s23 }
   0x5   : > { %s286_s29 = ssub.s32 %s3049_s24, %s3147_s27  ;;  %p299_p0 = scmp.ne.s32.totalorder %s3045_s23, %s3041_s22 }
   0x6   : > { %p287_p1 = scmp.eq.s32.totalorder %s286_s29, 0  ;;  %p300_p2 = scmp.eq.s32.totalorder %s3143_s25, 1 }
   0x7   : > { %p305_p3 = scmp.ne.s32.totalorder %s3041_s22, %s3037_s21  ;;  %p306_p4 = scmp.eq.s32.totalorder %s2471_s26, 1 }
   0x8   : > { %s3158_s30 = scalar_select %p287_p1, %s3045_s23, %s289_s28  }
   0x9   : > { %p3160_p5 = por %p300_p2, %p299_p0  ;;  %p3164_p6 = por %p306_p4, %p305_p3 }
   0xa   : > { %3518 = sst [smem:[#allocation7_spill]] %s3158_s30  ;;  %p2474_p7 = scmp.ge.s32.totalorder %s3049_s24, 1 }
   0xb   : > { %p365_p8 = scmp.lt.s32.totalorder %s3049_s24, 3 }
   0xd   : > { %p366_p9 = pnand %p2474_p7, %p365_p8 }
   0xe   : > { %v2965_v0 = vld [vmem:[%s3506_s1 + $0x4] ss:$8 sps:$4 sm:$0xff] (!%p366_p9)   ;;  %p407_p10 = scmp.lt.s32.totalorder (!%p366_p9), %s3143_s25, 1  ;;  %v2967_v1 = vld [vmem:[%s3506_s1] ss:$8 sps:$4 sm:$0xff] (!%p366_p9)   ;;  %v3051_v2 = vmov (!%p366_p9), 0   ;;  %v538_v17 = vlaneseq (!%p366_p9) }
   0xf   : > { %369 = sbr.rel (%p366_p9) target bundleno = 1296 (0x510), region = 68  ;;  %495 = vmatprep.mubr.bf16.mxu0 (!%p366_p9), %v3051_v2  ;;  %463 = vmatprep.subr.bf16.mxu0 (!%p366_p9), %v2965_v0  ;;  %v2968_v3 = vld [vmem:[%s3506_s1 + $0x14] ss:$8 sps:$4 sm:$0xff] (!%p366_p9)   ;;  %v2970_v4 = vld [vmem:[%s3506_s1 + $0x10] ss:$8 sps:$4 sm:$0xff] (!%p366_p9)   ;;  %vm450_vm0 = vcmask (!%p366_p9), 261120  }
  0x10   : > { %464 = vmatpush1.bf16.msra.mxu0 (!%p366_p9), %v2967_v1  ;;  %v539_v18 = vshrl.u32 (!%p366_p9), %v538_v17, 7  ;;  %v536_v20 = vld [vmem:[%s3507_s2] sm:$0x3] (!%p366_p9)  ;;  %vm649_vm1 = vcmask (!%p366_p9), 130048   ;;  %vm600_vm2 = vcmask (!%p366_p9), 124928   ;;  %v3052_v25 = vmov (!%p366_p9), 0.0  }
  0x11   : > { %465 = vmatprep.subr.bf16.mxu0 (!%p366_p9), %v2968_v3  ;;  %v564_v22 = vld [vmem:[%s3508_s3] sm:$0x3] (!%p366_p9)  ;;  %601 = vst.msk [vmem:[#allocation2] sm:$0x7] (!%p366_p9), %vm600_vm2, %v3052_v25  ;;  %602 = vst.msk [vmem:[#allocation2 + $0x10] sm:$0x7] (!%p366_p9), %vm600_vm2, %v3052_v25 }
  0x12   : > { %v540_v19 = vsub.s32 (!%p366_p9), 0, %v539_v18  ;;  %v544_v24 = vsub.s32 (!%p366_p9), 1, %v539_v18  ;;  %603 = vst.msk [vmem:[#allocation2 + $0x20] sm:$0x7] (!%p366_p9), %vm600_vm2, %v3052_v25  ;;  %604 = vst.msk [vmem:[#allocation2 + $0x30] sm:$0x7] (!%p366_p9), %vm600_vm2, %v3052_v25 }
  0x13   : > { %605 = vst.msk [vmem:[#allocation2 + $0x40] sm:$0x7] (!%p366_p9), %vm600_vm2, %v3052_v25  ;;  %606 = vst.msk [vmem:[#allocation2 + $0x50] sm:$0x7] (!%p366_p9), %vm600_vm2, %v3052_v25  ;;  %s3053_s26 = smov (!%p366_p9), 112   ;;  %v2971_v50 = vld [vmem:[%s3509_s4 + $0x8] sm:$0xff] (!%p366_p9)  }
  0x14   : > { %466 = vmatpush1.bf16.msra.mxu0 (!%p366_p9), %v2970_v4  ;;  %v3194_v21 = vrot.slane (!%p366_p9), %v536_v20, %v540_v19  ;;  %v3199_v23 = vrot.slane (!%p366_p9), %v564_v22, %v540_v19  ;;  %607 = vst.msk [vmem:[#allocation2 + $0x60] sm:$0x7] (!%p366_p9), %vm600_vm2, %v3052_v25  ;;  %608 = vst.msk [vmem:[#allocation2 + $0x70] sm:$0x7] (!%p366_p9), %vm600_vm2, %v3052_v25  ;;  %v3223_v26 = vrot.slane (!%p366_p9), %v536_v20, %v544_v24  ;;  %s404_s28 = sand.u32 (!%p366_p9), 1, %s3041_s22   ;;  %s2576_s16 = sshll.u32 (!%p366_p9), %s3143_s25, 10 }
  0x15   : > { %609 = vst.msk [vmem:[#allocation2 + $0xb] sm:$0x7] (!%p366_p9), %vm600_vm2, %v3052_v25  ;;  %610 = vst.msk [vmem:[#allocation2 + $0x1b] sm:$0x7] (!%p366_p9), %vm600_vm2, %v3052_v25  ;;  %v3225_v28 = vrot.slane (!%p366_p9), %v564_v22, %v544_v24  ;;  %2657 = vmatprep.subr.bf16.mxu1 (!%p366_p9), %v2971_v50  ;;  %s3458_s19 = scalar_lea.hbm (!%p366_p9), %s3517_s12, %s2576_s16 }
  0x16   : > { %s408_s29 = scalar_select %p407_p10, %s3143_s25, 1  ;;  %611 = vst.msk [vmem:[#allocation2 + $0x2b] sm:$0x7] %vm600_vm2, %v3052_v25  ;;  %612 = vst.msk [vmem:[#allocation2 + $0x3b] sm:$0x7] %vm600_vm2, %v3052_v25  ;;  %2658 = vmatpush3.bf16.msra.mxu1 %v2971_v50 }
  0x17   : > { %613 = vst.msk [vmem:[#allocation2 + $0x4b] sm:$0x7] %vm600_vm2, %v3052_v25  ;;  %614 = vst.msk [vmem:[#allocation2 + $0x5b] sm:$0x7] %vm600_vm2, %v3052_v25  ;;  %s3464_s25 = scalar_lea.sflag [#allocation5], %s404_s28 }
  0x18   : > { %s2575_s15 = sshll.u32 %s408_s29, 6  ;;  %615 = vst.msk [vmem:[#allocation2 + $0x6b] sm:$0x7] %vm600_vm2, %v3052_v25  ;;  %616 = vst.msk [vmem:[#allocation2 + $0x7b] sm:$0x7] %vm600_vm2, %v3052_v25  ;;  %s2475_s29 = sshll.u32 %s404_s28, 6 }
  0x19   : > { %s411_s17 = scalar_lea.vmem %s3505_s0, %s2575_s15  ;;  %1415 = vst.msk [vmem:[#allocation3] sm:$0xff] %vm649_vm1, %v3052_v25  ;;  %1416 = vst.msk [vmem:[#allocation3 + $0x8] sm:$0xff] %vm649_vm1, %v3052_v25  ;;  %s406_s15 = scalar_lea.vmem [#allocation4], %s2475_s29 }
  0x1a   : > { %v414_v5 = vld [vmem:[%s411_s17] sm:$0xff]  ;;  %v415_v6 = vld [vmem:[%s411_s17 + $0x8] sm:$0xff]  ;;  %v416_v8 = vld [vmem:[%s411_s17 + $0x10] sm:$0xff]  ;;  %1417 = vst.msk [vmem:[#allocation3 + $0x10] sm:$0xff] %vm649_vm1, %v3052_v25 }
  0x1b   : > { %v422_v7 = vpack.c.bf16 %v415_v6, %v414_v5  ;;  %v417_v9 = vld [vmem:[%s411_s17 + $0x18] sm:$0xff]  ;;  %v418_v11 = vld [vmem:[%s411_s17 + $0x20] sm:$0xff]  ;;  %v419_v12 = vld [vmem:[%s411_s17 + $0x28] sm:$0xff]  ;;  %1419 = vst.msk [vmem:[#allocation3 + $0x58] sm:$0xff] %vm649_vm1, %v3052_v25 }
  0x1c   : > { %v423_v10 = vpack.c.bf16 %v417_v9, %v416_v8  ;;  %v424_v13 = vpack.c.bf16 %v419_v12, %v418_v11  ;;  %v420_v14 = vld [vmem:[%s411_s17 + $0x30] sm:$0xff]  ;;  %v421_v15 = vld [vmem:[%s411_s17 + $0x38] sm:$0xff]  ;;  %1420 = vst.msk [vmem:[#allocation3 + $0x60] sm:$0xff] %vm649_vm1, %v3052_v25  ;;  %1421 = vst.msk [vmem:[#allocation3 + $0x68] sm:$0xff] %vm649_vm1, %v3052_v25  ;;  %s2409_s17 = sshll.u32 %s406_s15, 4  ;;  %s3460_s17 = int_to_ptr.vmem [resolvable:$true] %s2409_s17 }
  0x1d   : > { %2482 = vmatmul.mubr.msk.bf16.vlgmr.msra.gmra.mrb[0].mxu0 %vm450_vm0, %v422_v7  ;;  %v425_v16 = vpack.c.bf16 %v421_v15, %v420_v14  ;;  %v2972_v5 = vld [vmem:[%s3509_s4] sm:$0xff]   ;;  %s2987_s20 = scalar_lea.vmem %s3460_s17, 1024 }
  0x1e   : > { %505 = vmatprep.mubr.bf16.mxu0 %v3051_v2  ;;  %2667 = vmatprep.subr.bf16.mxu1 %v2972_v5  ;;  %p2988_p11 = scmp.ne.s32.totalorder %s3460_s17, %s2987_s20 }
  0x20   : > { %p2989_p12 = pnand %p2988_p11, %p3160_p5 }
  0x22   : > { %p2990_p13 = pneg %p2989_p12 }
  0x25   : > { %2483 = vmatmul.mubr.msk.bf16.gmra.mrb[4].mxu0 %vm450_vm0, %v423_v10 }
  0x26   : > { %515 = vmatprep.mubr.bf16.mxu0 %v3051_v2 }
  0x2d   : > { %2484 = vmatmul.mubr.msk.bf16.gmra.mrb[8].mxu0 %vm450_vm0, %v424_v13 }
  0x2e   : > { %525 = vmatprep.mubr.bf16.mxu0 %v3051_v2 }
  0x35   : > { %2485 = vmatmul.mubr.msk.bf16.gmra.mrb[12].mxu0 %vm450_vm0, %v425_v16 }
  0xf0   : > { %v497_v27 = vpop.f32.mrb[0].mxu0 }
  0xf1   : > { %v548_v29 = vmul.f32 %v3194_v21, %v497_v27  ;;  %v499_v30 = vpop.f32.mrb[1].mxu0 }
  0xf2   : > { %v549_v31 = vmul.f32 %v3223_v26, %v499_v30  ;;  %v501_v32 = vpop.f32.mrb[2].mxu0 }
  0xf3   : > { %v550_v33 = vmul.f32 %v3194_v21, %v501_v32  ;;  %v503_v34 = vpop.f32.mrb[3].mxu0  ;;  %v3231_v35 = vadd.f32 %v3199_v23, %v548_v29 }
  0xf4   : > { %v551_v36 = vmul.f32 %v3223_v26, %v503_v34  ;;  %v577_v37 = vadd.f32 %v3225_v28, %v549_v31 }
  0xf5   : > { %v3236_v38 = vadd.f32 %v3199_v23, %v550_v33 }
  0xf6   : > { %v579_v39 = vadd.f32 %v3225_v28, %v551_v36  ;;  %v592_v40 = vmax.f32 %v577_v37, 0.0 }
  0xf8   : > { %v593_v41 = vmax.f32 %v579_v39, 0.0  ;;  %625 = vrot.lane.b32.xlu0 %v592_v40, %s3053_s26  ;;  %v507_v42 = vpop.f32.mrb[4].mxu0 }
  0xf9   : > { %v552_v43 = vmul.f32 %v3194_v21, %v507_v42  ;;  %v509_v44 = vpop.f32.mrb[5].mxu0 }
  0xfa   : > { %v3241_v45 = vpack.c.bf16 %v593_v41, %v592_v40  ;;  %v553_v46 = vmul.f32 %v3223_v26, %v509_v44  ;;  %v511_v47 = vpop.f32.mrb[6].mxu0 }
  0xfb   : > { %v554_v48 = vmul.f32 %v3194_v21, %v511_v47  ;;  %v513_v49 = vpop.f32.mrb[7].mxu0  ;;  %v3249_v51 = vadd.f32 %v3199_v23, %v552_v43 }
  0xfc   : > { %v555_v52 = vmul.f32 %v3223_v26, %v513_v49  ;;  %627 = vrot.lane.b32.xlu0 %v593_v41, %s3053_s26  ;;  %v581_v53 = vadd.f32 %v3225_v28, %v553_v46  ;;  %v2973_v41 = vld [vmem:[%s3509_s4 + $0x10] sm:$0xff]  }
  0xfd   : > { %v3255_v54 = vadd.f32 %v3199_v23, %v554_v48 }
  0xfe   : > { %v583_v55 = vadd.f32 %v3225_v28, %v555_v52  ;;  %v594_v56 = vmax.f32 %v581_v53, 0.0 }
 0x100   : > { %v595_v57 = vmax.f32 %v583_v55, 0.0  ;;  %629 = vrot.lane.b32.xlu1 %v594_v56, %s3053_s26  ;;  %v517_v58 = vpop.f32.mrb[8].mxu0 }
 0x101   : > { %v556_v59 = vmul.f32 %v3194_v21, %v517_v58  ;;  %v519_v60 = vpop.f32.mrb[9].mxu0 }
 0x102   : > { %v3260_v61 = vpack.c.bf16 %v595_v57, %v594_v56  ;;  %v557_v62 = vmul.f32 %v3223_v26, %v519_v60  ;;  %v521_v63 = vpop.f32.mrb[10].mxu0 }
 0x103   : > { %v558_v0 = vmul.f32 %v3194_v21, %v521_v63  ;;  %v523_v1 = vpop.f32.mrb[11].mxu0  ;;  %v3265_v2 = vadd.f32 %v3199_v23, %v556_v59 }
 0x104   : > { %v585_v3 = vadd.f32 %v3225_v28, %v557_v62  ;;  %v559_v4 = vmul.f32 %v3223_v26, %v523_v1  ;;  %631 = vrot.lane.b32.xlu1 %v595_v57, %s3053_s26  ;;  %v2974_v62 = vld [vmem:[%s3509_s4 + $0x18] sm:$0xff]  }
 0x105   : > { %v3274_v6 = vadd.f32 %v3199_v23, %v558_v0 }
 0x106   : > { %v596_v7 = vmax.f32 %v585_v3, 0.0  ;;  %v587_v8 = vadd.f32 %v3225_v28, %v559_v4 }
 0x108   : > { %v597_v9 = vmax.f32 %v587_v8, 0.0  ;;  %633 = vrot.lane.b32.xlu0 %v596_v7, %s3053_s26  ;;  %v527_v10 = vpop.f32.mrb[12].mxu0 }
 0x109   : > { %v560_v11 = vmul.f32 %v3194_v21, %v527_v10  ;;  %v529_v12 = vpop.f32.mrb[13].mxu0 }
 0x10a   : > { %v3279_v13 = vpack.c.bf16 %v597_v9, %v596_v7  ;;  %v561_v14 = vmul.f32 %v3223_v26, %v529_v12  ;;  %635 = vrot.lane.b32.xlu1 %v597_v9, %s3053_s26  ;;  %v531_v15 = vpop.f32.mrb[14].mxu0 }
 0x10b   : > { %v562_v16 = vmul.f32 %v3194_v21, %v531_v15  ;;  %v533_v17 = vpop.f32.mrb[15].mxu0  ;;  %v3285_v18 = vadd.f32 %v3199_v23, %v560_v11 }
 0x10c   : > { %v589_v19 = vadd.f32 %v3225_v28, %v561_v14  ;;  %v563_v20 = vmul.f32 %v3223_v26, %v533_v17  ;;  %v2975_v14 = vld [vmem:[%s3509_s4 + $0x20] sm:$0xff]  }
 0x10d   : > { %v3290_v22 = vadd.f32 %v3199_v23, %v562_v16  ;;  %v2978_v23 = vld [vmem:[%s3512_s7 + $0x8] sm:$0xff]  }
 0x10e   : > { %v598_v24 = vmax.f32 %v589_v19, 0.0  ;;  %v591_v25 = vadd.f32 %v3225_v28, %v563_v20  ;;  %2727 = vmatprep.subr.bf16.mxu0 %v2978_v23 }
 0x10f   : > { %2728 = vmatpush3.bf16.msra.mxu0 %v2978_v23 }
 0x110   : > { %v599_v27 = vmax.f32 %v591_v25, 0.0  ;;  %637 = vrot.lane.b32.xlu0 %v598_v24, %s3053_s26 }
 0x112   : > { %v3294_v29 = vpack.c.bf16 %v599_v27, %v598_v24  ;;  %639 = vrot.lane.b32.xlu1 %v599_v27, %s3053_s26  ;;  %s3054_s26 = smov [#allocation4]  }
 0x113   : > { %s2991_s29 = sshll.u32 %s3054_s26, 4  ;;  %s2992_s29 = int_to_ptr.vmem [resolvable:$false] %s2991_s29 }
 0x114   : > { %s2993_s16 = scalar_lea.vmem %s2992_s29, 2048  ;;  %p2994_p0 = scmp.lt.s32.totalorder %s3460_s17, %s2992_s29 }
 0x115   : > { %p2995_p1 = scmp.lt.s32.totalorder %s2993_s16, %s2987_s20 }
 0x117   : > { %p2996_p2 = por %p2995_p1, %p2994_p0 }
 0x119   : > { %p2997_p3 = pnand %p2996_p2, %p2990_p13 }
 0x16a   : > { %v626_v21 = vpop.permute.xlu0 %625 }
 0x16b   : > { %650 = vst.msk [vmem:[#allocation2 + $0x3] sm:$0xff] %vm649_vm1, %v626_v21 }
 0x16e   : > { %v628_v30 = vpop.permute.xlu0 %627 }
 0x16f   : > { %651 = vst.msk [vmem:[#allocation2 + $0x13] sm:$0xff] %vm649_vm1, %v628_v30 }
 0x172   : > { %v630_v26 = vpop.permute.xlu1 %629  ;;  %v684_v31 = vld [vmem:[#allocation2 + $0x1] sm:$0xff] }
 0x173   : > { %652 = vst.msk [vmem:[#allocation2 + $0x23] sm:$0xff] %vm649_vm1, %v630_v26  ;;  %v672_v53 = vld [vmem:[#allocation2] sm:$0xff] }
 0x174   : > { %v965_v24 = vld [vmem:[#allocation2 + $0x3] sm:$0xff] }
 0x176   : > { %v632_v28 = vpop.permute.xlu1 %631  ;;  %v685_v32 = vld [vmem:[#allocation2 + $0x11] sm:$0xff] }
 0x177   : > { %653 = vst.msk [vmem:[#allocation2 + $0x33] sm:$0xff] %vm649_vm1, %v632_v28  ;;  %v692_v33 = vpack.c.bf16 %v685_v32, %v684_v31  ;;  %v673_v48 = vld [vmem:[#allocation2 + $0x10] sm:$0xff]  ;;  %v2976_v28 = vld [vmem:[%s3509_s4 + $0x28] sm:$0xff]  }
 0x178   : > { %v680_v55 = vpack.c.bf16 %v673_v48, %v672_v53  ;;  %v863_v1 = vld [vmem:[#allocation2 + $0x12] sm:$0xff]  ;;  %v1171_v53 = vld [vmem:[#allocation2 + $0x5] sm:$0xff] }
 0x179   : > { %2659 = vmatprep.mubr.msk.bf16.mxu1 %vm649_vm1, %v692_v33  ;;  %v966_v17 = vld [vmem:[#allocation2 + $0x13] sm:$0xff] }
 0x17a   : > { %v634_v34 = vpop.permute.xlu0 %633  ;;  %v686_v37 = vld [vmem:[#allocation2 + $0x21] sm:$0xff]  ;;  %v973_v25 = vpack.c.bf16 %v966_v17, %v965_v24  ;;  %v1069_v33 = vld [vmem:[#allocation2 + $0x14] sm:$0xff] }
 0x17b   : > { %654 = vst.msk [vmem:[#allocation2 + $0x43] sm:$0xff] %vm649_vm1, %v634_v34  ;;  %v674_v58 = vld [vmem:[#allocation2 + $0x20] sm:$0xff]  ;;  %v3351_v17 = vld [vmem:[#allocation3 + $0x8] sm:$0xff] }
 0x17c   : > { %v636_v36 = vpop.permute.xlu1 %635  ;;  %v864_v10 = vld [vmem:[#allocation2 + $0x22] sm:$0xff] }
 0x17d   : > { %655 = vst.msk [vmem:[#allocation2 + $0x53] sm:$0xff] %vm649_vm1, %v636_v36  ;;  %v967_v30 = vld [vmem:[#allocation2 + $0x23] sm:$0xff] }
 0x17e   : > { %v687_v39 = vld [vmem:[#allocation2 + $0x31] sm:$0xff] }
 0x17f   : > { %v693_v40 = vpack.c.bf16 %v687_v39, %v686_v37  ;;  %v675_v56 = vld [vmem:[#allocation2 + $0x30] sm:$0xff]  ;;  %v1068_v37 = vld [vmem:[#allocation2 + $0x4] sm:$0xff] }
 0x180   : > { %v681_v59 = vpack.c.bf16 %v675_v56, %v674_v58  ;;  %v865_v8 = vld [vmem:[#allocation2 + $0x32] sm:$0xff]  ;;  %v1076_v39 = vpack.c.bf16 %v1069_v33, %v1068_v37  ;;  %v1173_v58 = vld [vmem:[#allocation2 + $0x25] sm:$0xff] }
 0x181   : > { %2660 = vmatmul.mubr.msk.bf16.vlgmr.msra.gmra.mrb[0].mxu1 %vm649_vm1, %v693_v40  ;;  %v871_v11 = vpack.c.bf16 %v865_v8, %v864_v10  ;;  %v968_v27 = vld [vmem:[#allocation2 + $0x33] sm:$0xff] }
 0x182   : > { %v638_v42 = vpop.permute.xlu0 %637  ;;  %2668 = vmatpush3.bf16.msra.mxu1 %v2972_v5  ;;  %v688_v44 = vld [vmem:[#allocation2 + $0x41] sm:$0xff]  ;;  %v974_v23 = vpack.c.bf16 %v968_v27, %v967_v30  ;;  %v1071_v40 = vld [vmem:[#allocation2 + $0x34] sm:$0xff]  ;;  %v2521_v27 = vld [vmem:[%s3510_s5] ss:$0 sm:$0xff] }
 0x183   : > { %656 = vst.msk [vmem:[#allocation2 + $0x63] sm:$0xff] %vm649_vm1, %v638_v42  ;;  %2677 = vmatprep.subr.bf16.mxu1 %v2973_v41  ;;  %v676_v60 = vld [vmem:[#allocation2 + $0x40] sm:$0xff]  ;;  %v1174_v56 = vld [vmem:[#allocation2 + $0x35] sm:$0xff] }
 0x184   : > { %v640_v43 = vpop.permute.xlu1 %639  ;;  %v689_v46 = vld [vmem:[#allocation2 + $0x51] sm:$0xff]  ;;  %v862_v5 = vld [vmem:[#allocation2 + $0x2] sm:$0xff]  ;;  %v2522_v30 = vld [vmem:[%s3511_s6] ss:$0 sm:$0xff] }
 0x185   : > { %657 = vst.msk [vmem:[#allocation2 + $0x73] sm:$0xff] %vm649_vm1, %v640_v43  ;;  %v694_v47 = vpack.c.bf16 %v689_v46, %v688_v44  ;;  %v677_v57 = vld [vmem:[#allocation2 + $0x50] sm:$0xff]  ;;  %v870_v7 = vpack.c.bf16 %v863_v1, %v862_v5  ;;  %v866_v12 = vld [vmem:[#allocation2 + $0x42] sm:$0xff] }
 0x186   : > { %v682_v63 = vpack.c.bf16 %v677_v57, %v676_v60  ;;  %v867_v9 = vld [vmem:[#allocation2 + $0x52] sm:$0xff]  ;;  %v969_v26 = vld [vmem:[#allocation2 + $0x43] sm:$0xff] }
 0x187   : > { %2663 = vmatprep.mubr.msk.bf16.mxu1 %vm649_vm1, %v694_v47  ;;  %v872_v15 = vpack.c.bf16 %v867_v9, %v866_v12  ;;  %v970_v21 = vld [vmem:[#allocation2 + $0x53] sm:$0xff]  ;;  %v1070_v42 = vld [vmem:[#allocation2 + $0x24] sm:$0xff] }
 0x188   : > { %v975_v31 = vpack.c.bf16 %v970_v21, %v969_v26  ;;  %v1077_v43 = vpack.c.bf16 %v1071_v40, %v1070_v42  ;;  %v1072_v44 = vld [vmem:[#allocation2 + $0x44] sm:$0xff]  ;;  %v2977_v46 = vld [vmem:[%s3509_s4 + $0x30] sm:$0xff]  }
 0x189   : > { %v1176_v57 = vld [vmem:[#allocation2 + $0x55] sm:$0xff]  ;;  %v1175_v60 = vld [vmem:[#allocation2 + $0x45] sm:$0xff] }
 0x18a   : > { %v690_v49 = vld [vmem:[#allocation2 + $0x61] sm:$0xff]  ;;  %v1279_v8 = vld [vmem:[#allocation2 + $0x56] sm:$0xff] }
 0x18b   : > { %v678_v3 = vld [vmem:[#allocation2 + $0x60] sm:$0xff] }
 0x18c   : > { %v691_v50 = vld [vmem:[#allocation2 + $0x71] sm:$0xff]  ;;  %v868_v19 = vld [vmem:[#allocation2 + $0x62] sm:$0xff] }
 0x18d   : > { %v695_v52 = vpack.c.bf16 %v691_v50, %v690_v49  ;;  %v679_v0 = vld [vmem:[#allocation2 + $0x70] sm:$0xff]  ;;  %v971_v34 = vld [vmem:[#allocation2 + $0x63] sm:$0xff] }
 0x18e   : > { %v683_v4 = vpack.c.bf16 %v679_v0, %v678_v3  ;;  %v869_v16 = vld [vmem:[#allocation2 + $0x72] sm:$0xff]  ;;  %v1074_v50 = vld [vmem:[#allocation2 + $0x64] sm:$0xff] }
 0x18f   : > { %2664 = vmatmul.mubr.msk.bf16.gmra.mrb[4].mxu1 %vm649_vm1, %v695_v52  ;;  %v873_v20 = vpack.c.bf16 %v869_v16, %v868_v19  ;;  %v972_v32 = vld [vmem:[#allocation2 + $0x73] sm:$0xff]  ;;  %v1177_v1 = vld [vmem:[#allocation2 + $0x65] sm:$0xff] }
 0x190   : > { %2669 = vmatprep.mubr.msk.bf16.mxu1 %vm649_vm1, %v680_v55  ;;  %v976_v36 = vpack.c.bf16 %v972_v32, %v971_v34  ;;  %v1075_v48 = vld [vmem:[#allocation2 + $0x74] sm:$0xff]  ;;  %v1276_v9 = vld [vmem:[#allocation2 + $0x26] sm:$0xff] }
 0x191   : > { %v1172_v49 = vld [vmem:[#allocation2 + $0x15] sm:$0xff]  ;;  %v1079_v52 = vpack.c.bf16 %v1075_v48, %v1074_v50 }
 0x192   : > { %v1179_v55 = vpack.c.bf16 %v1172_v49, %v1171_v53  ;;  %v1275_v0 = vld [vmem:[#allocation2 + $0x16] sm:$0xff] }
 0x193   : > { %v3353_v19 = vld [vmem:[#allocation3 + $0x10] sm:$0xff] }
 0x194   : > { %v1466_v24 = vpack.c.bf16 %v3353_v19, %v3351_v17 }
 0x196   : > { %2729 = vmatprep.mubr.msk.bf16.mxu0 %vm649_vm1, %v1466_v24  ;;  %v2981_v24 = vld [vmem:[%s3512_s7 + $0x18] sm:$0xff]  }
 0x197   : > { %2670 = vmatmul.mubr.msk.bf16.vlgmr.msra.gmra.mrb[0].mxu1 %vm649_vm1, %v681_v59  ;;  %v1180_v59 = vpack.c.bf16 %v1174_v56, %v1173_v58 }
 0x198   : > { %2678 = vmatpush3.bf16.msra.mxu1 %v2973_v41  ;;  %2673 = vmatprep.mubr.msk.bf16.mxu1 %vm649_vm1, %v682_v63  ;;  %v1073_v41 = vld [vmem:[#allocation2 + $0x54] sm:$0xff] }
 0x199   : > { %2687 = vmatprep.subr.bf16.mxu1 %v2974_v62  ;;  %v1078_v47 = vpack.c.bf16 %v1073_v41, %v1072_v44  ;;  %v1178_v63 = vld [vmem:[#allocation2 + $0x75] sm:$0xff] }
 0x19a   : > { %v1182_v3 = vpack.c.bf16 %v1178_v63, %v1177_v1 }
 0x19f   : > { %2674 = vmatmul.mubr.msk.bf16.gmra.mrb[4].mxu1 %vm649_vm1, %v683_v4  ;;  %v1274_v4 = vld [vmem:[#allocation2 + $0x6] sm:$0xff] }
 0x1a0   : > { %2679 = vmatprep.mubr.msk.bf16.mxu1 %vm649_vm1, %v870_v7  ;;  %v1282_v5 = vpack.c.bf16 %v1275_v0, %v1274_v4  ;;  %v1277_v7 = vld [vmem:[#allocation2 + $0x36] sm:$0xff] }
 0x1a1   : > { %v1283_v10 = vpack.c.bf16 %v1277_v7, %v1276_v9 }
 0x1a7   : > { %2680 = vmatmul.mubr.msk.bf16.vlgmr.msra.gmra.mrb[0].mxu1 %vm649_vm1, %v871_v11  ;;  %v1278_v11 = vld [vmem:[#allocation2 + $0x46] sm:$0xff] }
 0x1a8   : > { %2688 = vmatpush3.bf16.msra.mxu1 %v2974_v62  ;;  %2683 = vmatprep.mubr.msk.bf16.mxu1 %vm649_vm1, %v872_v15  ;;  %v1181_v62 = vpack.c.bf16 %v1176_v57, %v1175_v60  ;;  %v1284_v12 = vpack.c.bf16 %v1279_v8, %v1278_v11  ;;  %v1280_v15 = vld [vmem:[#allocation2 + $0x66] sm:$0xff]  ;;  %v2980_v8 = vld [vmem:[%s3512_s7 + $0x10] sm:$0xff]  }
 0x1a9   : > { %2697 = vmatprep.subr.bf16.mxu1 %v2975_v14 }
 0x1af   : > { %2684 = vmatmul.mubr.msk.bf16.gmra.mrb[4].mxu1 %vm649_vm1, %v873_v20  ;;  %v2979_v20 = vld [vmem:[%s3512_s7] sm:$0xff]  }
 0x1b0   : > { %2689 = vmatprep.mubr.msk.bf16.mxu1 %vm649_vm1, %v973_v25  ;;  %2737 = vmatprep.subr.bf16.mxu0 %v2979_v20  ;;  %v2985_v25 = vld [vmem:[%s3516_s11] sm:$0xff]  }
 0x1b7   : > { %2690 = vmatmul.mubr.msk.bf16.vlgmr.msra.gmra.mrb[0].mxu1 %vm649_vm1, %v974_v23 }
 0x1b8   : > { %2698 = vmatpush3.bf16.msra.mxu1 %v2975_v14  ;;  %2693 = vmatprep.mubr.msk.bf16.mxu1 %vm649_vm1, %v975_v31  ;;  %v1281_v14 = vld [vmem:[#allocation2 + $0x76] sm:$0xff] }
 0x1b9   : > { %2707 = vmatprep.subr.bf16.mxu1 %v2976_v28  ;;  %v1285_v16 = vpack.c.bf16 %v1281_v14, %v1280_v15 }
 0x1bf   : > { %2694 = vmatmul.mubr.msk.bf16.gmra.mrb[4].mxu1 %vm649_vm1, %v976_v36 }
 0x1c0   : > { %2699 = vmatprep.mubr.msk.bf16.mxu1 %vm649_vm1, %v1076_v39 }
 0x1c7   : > { %2700 = vmatmul.mubr.msk.bf16.vlgmr.msra.gmra.mrb[0].mxu1 %vm649_vm1, %v1077_v43 }
 0x1c8   : > { %2708 = vmatpush3.bf16.msra.mxu1 %v2976_v28  ;;  %2703 = vmatprep.mubr.msk.bf16.mxu1 %vm649_vm1, %v1078_v47 }
 0x1c9   : > { %2717 = vmatprep.subr.bf16.mxu1 %v2977_v46 }
 0x1cf   : > { %2704 = vmatmul.mubr.msk.bf16.gmra.mrb[4].mxu1 %vm649_vm1, %v1079_v52 }
 0x1d0   : > { %2709 = vmatprep.mubr.msk.bf16.mxu1 %vm649_vm1, %v1179_v55 }
 0x1d7   : > { %2710 = vmatmul.mubr.msk.bf16.vlgmr.msra.gmra.mrb[0].mxu1 %vm649_vm1, %v1180_v59 }
 0x1d8   : > { %2718 = vmatpush3.bf16.msra.mxu1 %v2977_v46  ;;  %2713 = vmatprep.mubr.msk.bf16.mxu1 %vm649_vm1, %v1181_v62 }
 0x1d9   : > { %2797 = vmatprep.subr.bf16.mxu1 %v2985_v25 }
 0x1df   : > { %2714 = vmatmul.mubr.msk.bf16.gmra.mrb[4].mxu1 %vm649_vm1, %v1182_v3 }
 0x1e0   : > { %2719 = vmatprep.mubr.msk.bf16.mxu1 %vm649_vm1, %v1282_v5 }
 0x1e7   : > { %2720 = vmatmul.mubr.msk.bf16.vlgmr.msra.gmra.mrb[0].mxu1 %vm649_vm1, %v1283_v10  ;;  %v1445_v10 = vld [vmem:[#allocation3] sm:$0xff] }
 0x1e8   : > { %2723 = vmatprep.mubr.msk.bf16.mxu1 %vm649_vm1, %v1284_v12  ;;  %2798 = vmatpush3.bf16.msra.mxu1 %v2985_v25  ;;  %v1453_v14 = vpack.c.bf16 %v3351_v17, %v1445_v10  ;;  %v2982_v17 = vld [vmem:[%s3512_s7 + $0x20] sm:$0xff]  }
 0x1ef   : > { %2724 = vmatmul.mubr.msk.bf16.gmra.mrb[4].mxu1 %vm649_vm1, %v1285_v16 }
 0x2ba   : > { %v2721_v21 = vpop.f32.mrb[0].mxu1 }
 0x2bb   : > { %v1386_v23 = vmul.f32 %v2721_v21, %v2521_v27  ;;  %v1338_v26 = vpop.f32.mrb[1].mxu1  ;;  %v2983_v21 = vld [vmem:[%s3512_s7 + $0x28] sm:$0xff]  }
 0x2bc   : > { %v1384_v28 = vmul.f32 %v2521_v27, %v1338_v26  ;;  %v2722_v31 = vpop.f32.mrb[2].mxu1  ;;  %v2984_v26 = vld [vmem:[%s3512_s7 + $0x30] sm:$0xff]  }
 0x2bd   : > { %v1401_v32 = vadd.f32 %v2522_v30, %v1386_v23  ;;  %v1387_v33 = vmul.f32 %v2722_v31, %v2521_v27  ;;  %v1341_v34 = vpop.f32.mrb[3].mxu1 }
 0x2be   : > { %v1399_v36 = vadd.f32 %v2522_v30, %v1384_v28  ;;  %v1385_v37 = vmul.f32 %v2521_v27, %v1341_v34  ;;  %v1851_v28 = vld [vmem:[#allocation3 + $0x58] sm:$0xff]  ;;  %v2059_v34 = vld [vmem:[#allocation3 + $0x68] sm:$0xff] }
 0x2bf   : > { %v1409_v39 = vmax.f32 %v1401_v32, 0.0  ;;  %v1402_v40 = vadd.f32 %v2522_v30, %v1387_v33  ;;  %v1955_v32 = vld [vmem:[#allocation3 + $0x60] sm:$0xff] }
 0x2c0   : > { %v1407_v41 = vmax.f32 %v1399_v36, 0.0  ;;  %v1400_v42 = vadd.f32 %v2522_v30, %v1385_v37  ;;  %v1959_v33 = vpack.c.bf16 %v1955_v32, %v1851_v28  ;;  %v2063_v36 = vpack.c.bf16 %v2059_v34, %v1955_v32  ;;  %v2986_v37 = vld [vmem:[%s3515_s10] sm:$0xff]  }
 0x2c1   : > { %1425 = vst.msk [vmem:[#allocation3 + $0x28] sm:$0xff] %vm649_vm1, %v1409_v39  ;;  %v1410_v43 = vmax.f32 %v1402_v40, 0.0  ;;  %2807 = vmatprep.subr.bf16.mxu1 %v2986_v37  ;;  %v2558_v39 = vld [vmem:[%s3513_s8] ss:$0 sm:$0xff] }
 0x2c2   : > { %1423 = vst.msk [vmem:[#allocation3 + $0x18] sm:$0xff] %vm649_vm1, %v1407_v41  ;;  %v1408_v44 = vmax.f32 %v1400_v42, 0.0  ;;  %v2725_v46 = vpop.f32.mrb[4].mxu1  ;;  %v2559_v41 = vld [vmem:[%s3514_s9] ss:$0 sm:$0xff] }
 0x2c3   : > { %1426 = vst.msk [vmem:[#allocation3 + $0x30] sm:$0xff] %vm649_vm1, %v1410_v43  ;;  %v1390_v47 = vmul.f32 %v2725_v46, %v2521_v27  ;;  %v1354_v48 = vpop.f32.mrb[5].mxu1 }
 0x2c4   : > { %1424 = vst.msk [vmem:[#allocation3 + $0x20] sm:$0xff] %vm649_vm1, %v1408_v44  ;;  %v1388_v49 = vmul.f32 %v2521_v27, %v1354_v48  ;;  %v2726_v50 = vpop.f32.mrb[6].mxu1 }
 0x2c5   : > { %v1405_v52 = vadd.f32 %v2522_v30, %v1390_v47  ;;  %v1391_v53 = vmul.f32 %v2726_v50, %v2521_v27  ;;  %v1357_v55 = vpop.f32.mrb[7].mxu1 }
 0x2c6   : > { %v1403_v56 = vadd.f32 %v2522_v30, %v1388_v49  ;;  %v1389_v57 = vmul.f32 %v2521_v27, %v1357_v55 }
 0x2c7   : > { %v1413_v58 = vmax.f32 %v1405_v52, 0.0  ;;  %v1406_v59 = vadd.f32 %v2522_v30, %v1391_v53 }
 0x2c8   : > { %v1411_v60 = vmax.f32 %v1403_v56, 0.0  ;;  %v1404_v62 = vadd.f32 %v2522_v30, %v1389_v57  ;;  %v1462_v7 = vld [vmem:[#allocation3 + $0x28] sm:$0xff] }
 0x2c9   : > { %1429 = vst.msk [vmem:[#allocation3 + $0x48] sm:$0xff] %vm649_vm1, %v1413_v58  ;;  %v1414_v63 = vmax.f32 %v1406_v59, 0.0  ;;  %v1460_v3 = vld [vmem:[#allocation3 + $0x18] sm:$0xff] }
 0x2ca   : > { %1427 = vst.msk [vmem:[#allocation3 + $0x38] sm:$0xff] %vm649_vm1, %v1411_v60  ;;  %v1412_v0 = vmax.f32 %v1404_v62, 0.0  ;;  %v1463_v1 = vld [vmem:[#allocation3 + $0x30] sm:$0xff]  ;;  %v1454_v16 = vpack.c.bf16 %v1460_v3, %v3353_v19 }
 0x2cb   : > { %1430 = vst.msk [vmem:[#allocation3 + $0x50] sm:$0xff] %vm649_vm1, %v1414_v63  ;;  %v1461_v4 = vld [vmem:[#allocation3 + $0x20] sm:$0xff]  ;;  %v1468_v9 = vpack.c.bf16 %v1463_v1, %v1462_v7 }
 0x2cc   : > { %1428 = vst.msk [vmem:[#allocation3 + $0x40] sm:$0xff] %vm649_vm1, %v1412_v0  ;;  %v1467_v5 = vpack.c.bf16 %v1461_v4, %v1460_v3 }
 0x2ce   : > { %2730 = vmatmul.mubr.msk.bf16.vlgmr.msra.gmra.mrb[16].mxu0 %vm649_vm1, %v1467_v5 }
 0x2cf   : > { %2738 = vmatpush3.bf16.msra.mxu0 %v2979_v20  ;;  %2733 = vmatprep.mubr.msk.bf16.mxu0 %vm649_vm1, %v1468_v9  ;;  %v1455_v20 = vpack.c.bf16 %v1462_v7, %v1461_v4 }
 0x2d0   : > { %2747 = vmatprep.subr.bf16.mxu0 %v2980_v8  ;;  %v1644_v19 = vld [vmem:[#allocation3 + $0x48] sm:$0xff] }
 0x2d1   : > { %v1464_v11 = vld [vmem:[#allocation3 + $0x38] sm:$0xff] }
 0x2d2   : > { %v1456_v25 = vpack.c.bf16 %v1464_v11, %v1463_v1  ;;  %v1747_v30 = vld [vmem:[#allocation3 + $0x50] sm:$0xff] }
 0x2d3   : > { %v1465_v12 = vld [vmem:[#allocation3 + $0x40] sm:$0xff]  ;;  %v1751_v23 = vpack.c.bf16 %v1747_v30, %v1644_v19  ;;  %v1855_v31 = vpack.c.bf16 %v1851_v28, %v1747_v30 }
 0x2d4   : > { %v1469_v15 = vpack.c.bf16 %v1465_v12, %v1464_v11  ;;  %v1648_v27 = vpack.c.bf16 %v1644_v19, %v1465_v12 }
 0x2d6   : > { %2734 = vmatmul.mubr.msk.bf16.gmra.mrb[20].mxu0 %vm649_vm1, %v1469_v15 }
 0x2d7   : > { %2739 = vmatprep.mubr.msk.bf16.mxu0 %vm649_vm1, %v1453_v14 }
 0x2de   : > { %2740 = vmatmul.mubr.msk.bf16.vlgmr.msra.gmra.mrb[16].mxu0 %vm649_vm1, %v1454_v16 }
 0x2df   : > { %2748 = vmatpush3.bf16.msra.mxu0 %v2980_v8  ;;  %2743 = vmatprep.mubr.msk.bf16.mxu0 %vm649_vm1, %v1455_v20 }
 0x2e0   : > { %2757 = vmatprep.subr.bf16.mxu0 %v2981_v24 }
 0x2e6   : > { %2744 = vmatmul.mubr.msk.bf16.gmra.mrb[20].mxu0 %vm649_vm1, %v1456_v25 }
 0x2e7   : > { %2749 = vmatprep.mubr.msk.bf16.mxu0 %vm649_vm1, %v1454_v16 }
 0x2ee   : > { %2750 = vmatmul.mubr.msk.bf16.vlgmr.msra.gmra.mrb[16].mxu0 %vm649_vm1, %v1455_v20 }
 0x2ef   : > { %2758 = vmatpush3.bf16.msra.mxu0 %v2981_v24  ;;  %2753 = vmatprep.mubr.msk.bf16.mxu0 %vm649_vm1, %v1456_v25 }
 0x2f0   : > { %2767 = vmatprep.subr.bf16.mxu0 %v2982_v17 }
 0x2f6   : > { %2754 = vmatmul.mubr.msk.bf16.gmra.mrb[20].mxu0 %vm649_vm1, %v1648_v27 }
 0x2f7   : > { %2759 = vmatprep.mubr.msk.bf16.mxu0 %vm649_vm1, %v1467_v5 }
 0x2fe   : > { %2760 = vmatmul.mubr.msk.bf16.vlgmr.msra.gmra.mrb[16].mxu0 %vm649_vm1, %v1468_v9 }
 0x2ff   : > { %2768 = vmatpush3.bf16.msra.mxu0 %v2982_v17  ;;  %2763 = vmatprep.mubr.msk.bf16.mxu0 %vm649_vm1, %v1469_v15 }
 0x300   : > { %2777 = vmatprep.subr.bf16.mxu0 %v2983_v21 }
 0x306   : > { %2764 = vmatmul.mubr.msk.bf16.gmra.mrb[20].mxu0 %vm649_vm1, %v1751_v23 }
 0x307   : > { %2769 = vmatprep.mubr.msk.bf16.mxu0 %vm649_vm1, %v1455_v20 }
 0x30e   : > { %2770 = vmatmul.mubr.msk.bf16.vlgmr.msra.gmra.mrb[16].mxu0 %vm649_vm1, %v1456_v25 }
 0x30f   : > { %2778 = vmatpush3.bf16.msra.mxu0 %v2983_v21  ;;  %2773 = vmatprep.mubr.msk.bf16.mxu0 %vm649_vm1, %v1648_v27 }
 0x310   : > { %2787 = vmatprep.subr.bf16.mxu0 %v2984_v26 }
 0x316   : > { %2774 = vmatmul.mubr.msk.bf16.gmra.mrb[20].mxu0 %vm649_vm1, %v1855_v31 }
 0x317   : > { %2779 = vmatprep.mubr.msk.bf16.mxu0 %vm649_vm1, %v1468_v9 }
 0x31e   : > { %2780 = vmatmul.mubr.msk.bf16.vlgmr.msra.gmra.mrb[16].mxu0 %vm649_vm1, %v1469_v15 }
 0x31f   : > { %2788 = vmatpush3.bf16.msra.mxu0 %v2984_v26  ;;  %2783 = vmatprep.mubr.msk.bf16.mxu0 %vm649_vm1, %v1751_v23 }
 0x326   : > { %2784 = vmatmul.mubr.msk.bf16.gmra.mrb[20].mxu0 %vm649_vm1, %v1959_v33 }
 0x327   : > { %2789 = vmatprep.mubr.msk.bf16.mxu0 %vm649_vm1, %v1456_v25 }
 0x32e   : > { %2790 = vmatmul.mubr.msk.bf16.vlgmr.msra.gmra.mrb[16].mxu0 %vm649_vm1, %v1648_v27 }
 0x32f   : > { %2793 = vmatprep.mubr.msk.bf16.mxu0 %vm649_vm1, %v1855_v31 }
 0x336   : > { %2794 = vmatmul.mubr.msk.bf16.gmra.mrb[20].mxu0 %vm649_vm1, %v2063_v36 }
 0x401   : > { %v2791_v40 = vpop.f32.mrb[16].mxu0 }
 0x402   : > { %v2164_v42 = vmul.f32 %v2791_v40, %v2558_v39  ;;  %v2116_v43 = vpop.f32.mrb[17].mxu0 }
 0x403   : > { %v2162_v44 = vmul.f32 %v2558_v39, %v2116_v43  ;;  %v2792_v46 = vpop.f32.mrb[18].mxu0 }
 0x404   : > { %v2179_v47 = vadd.f32 %v2559_v41, %v2164_v42  ;;  %v2165_v48 = vmul.f32 %v2792_v46, %v2558_v39  ;;  %v2119_v49 = vpop.f32.mrb[19].mxu0 }
 0x405   : > { %v2177_v50 = vadd.f32 %v2559_v41, %v2162_v44  ;;  %v2163_v52 = vmul.f32 %v2558_v39, %v2119_v49 }
 0x406   : > { %v2180_v53 = vadd.f32 %v2559_v41, %v2165_v48  ;;  %v2187_v56 = vmax.f32 %v2179_v47, 0.0 }
 0x407   : > { %v2178_v55 = vadd.f32 %v2559_v41, %v2163_v52  ;;  %v2185_v58 = vmax.f32 %v2177_v50, 0.0 }
 0x408   : > { %v2188_v57 = vmax.f32 %v2180_v53, 0.0 }
 0x409   : > { %v2186_v59 = vmax.f32 %v2178_v55, 0.0  ;;  %v2795_v60 = vpop.f32.mrb[20].mxu0 }
 0x40a   : > { %v2200_v62 = vpack.c.bf16 %v2188_v57, %v2187_v56  ;;  %v2168_v63 = vmul.f32 %v2795_v60, %v2558_v39  ;;  %v2132_v0 = vpop.f32.mrb[21].mxu0 }
 0x40b   : > { %v2199_v1 = vpack.c.bf16 %v2186_v59, %v2185_v58  ;;  %v2166_v3 = vmul.f32 %v2558_v39, %v2132_v0  ;;  %v2796_v4 = vpop.f32.mrb[22].mxu0 }
 0x40c   : > { %v2183_v5 = vadd.f32 %v2559_v41, %v2168_v63  ;;  %v2169_v7 = vmul.f32 %v2796_v4, %v2558_v39  ;;  %v2135_v8 = vpop.f32.mrb[23].mxu0 }
 0x40d   : > { %v2181_v9 = vadd.f32 %v2559_v41, %v2166_v3  ;;  %v2167_v10 = vmul.f32 %v2558_v39, %v2135_v8  ;;  %2799 = vmatprep.mubr.msk.bf16.mxu1 %vm649_vm1, %v2199_v1 }
 0x40e   : > { %v2184_v11 = vadd.f32 %v2559_v41, %v2169_v7  ;;  %2800 = vmatmul.mubr.msk.bf16.vlgmr.msra.gmra.mrb[8].mxu1 %vm649_vm1, %v2200_v62  ;;  %v2191_v14 = vmax.f32 %v2183_v5, 0.0 }
 0x40f   : > { %v2182_v12 = vadd.f32 %v2559_v41, %v2167_v10  ;;  %2808 = vmatpush3.bf16.msra.mxu1 %v2986_v37  ;;  %v2189_v16 = vmax.f32 %v2181_v9, 0.0 }
 0x410   : > { %v2192_v15 = vmax.f32 %v2184_v11, 0.0 }
 0x411   : > { %v2190_v24 = vmax.f32 %v2182_v12, 0.0 }
 0x412   : > { %v2202_v20 = vpack.c.bf16 %v2192_v15, %v2191_v14 }
 0x413   : > { %v2201_v25 = vpack.c.bf16 %v2190_v24, %v2189_v16 }
 0x415   : > { %2803 = vmatprep.mubr.msk.bf16.mxu1 %vm649_vm1, %v2201_v25 }
 0x416   : > { %2804 = vmatmul.mubr.msk.bf16.gmra.mrb[12].mxu1 %vm649_vm1, %v2202_v20 }
 0x417   : > { %2809 = vmatprep.mubr.msk.bf16.mxu1 %vm649_vm1, %v3241_v45 }
 0x41e   : > { %2810 = vmatmul.mubr.msk.bf16.vlgmr.msra.gmra.mrb[8].mxu1 %vm649_vm1, %v3260_v61 }
 0x41f   : > { %2813 = vmatprep.mubr.msk.bf16.mxu1 %vm649_vm1, %v3279_v13 }
 0x426   : > { %2814 = vmatmul.mubr.msk.bf16.gmra.mrb[12].mxu1 %vm649_vm1, %v3294_v29 }
 0x4f1   : > { %v2811_v17 = vpop.f32.mrb[8].mxu1 }
 0x4f2   : > { %v2373_v19 = vadd.f32 %v2811_v17, %v3249_v51  ;;  %v2340_v27 = vpop.f32.mrb[9].mxu1 }
 0x4f3   : > { %v2371_v21 = vadd.f32 %v2340_v27, %v3231_v35  ;;  %v2812_v30 = vpop.f32.mrb[10].mxu1 }
 0x4f4   : > { %v2381_v45 = vmax.f32 %v2373_v19, 0.0  ;;  %v2374_v23 = vadd.f32 %v2812_v30, %v3255_v54  ;;  %v2343_v61 = vpop.f32.mrb[11].mxu1 }
 0x4f5   : > { %v2379_v26 = vmax.f32 %v2371_v21, 0.0  ;;  %v2372_v13 = vadd.f32 %v2343_v61, %v3236_v38 }
 0x4f6   : > { %2389 = vst [vmem:[%s406_s15 + $0x10] sm:$0xff] %v2381_v45  ;;  %v2382_v29 = vmax.f32 %v2374_v23, 0.0 }
 0x4f7   : > { %2387 = vst [vmem:[%s406_s15] sm:$0xff] %v2379_v26  ;;  %v2380_v28 = vmax.f32 %v2372_v13, 0.0 }
 0x4f8   : > { %2390 = vst [vmem:[%s406_s15 + $0x18] sm:$0xff] %v2382_v29 }
 0x4f9   : > { %2388 = vst [vmem:[%s406_s15 + $0x8] sm:$0xff] %v2380_v28  ;;  %v2815_v51 = vpop.f32.mrb[12].mxu1 }
 0x4fa   : > { %v2377_v31 = vadd.f32 %v2815_v51, %v3285_v18  ;;  %v2356_v35 = vpop.f32.mrb[13].mxu1 }
 0x4fb   : > { %v2375_v32 = vadd.f32 %v2356_v35, %v3265_v2  ;;  %v2816_v33 = vpop.f32.mrb[14].mxu1 }
 0x4fc   : > { %v2385_v54 = vmax.f32 %v2377_v31, 0.0  ;;  %v2378_v38 = vadd.f32 %v2816_v33, %v3290_v22  ;;  %v2359_v34 = vpop.f32.mrb[15].mxu1 }
 0x4fd   : > { %v2383_v36 = vmax.f32 %v2375_v32, 0.0  ;;  %v2376_v37 = vadd.f32 %v2359_v34, %v3274_v6 }
 0x4fe   : > { %2393 = vst [vmem:[%s406_s15 + $0x30] sm:$0xff] %v2385_v54  ;;  %v2386_v39 = vmax.f32 %v2378_v38, 0.0 }
 0x4ff   : > { %2391 = vst [vmem:[%s406_s15 + $0x20] sm:$0xff] %v2383_v36  ;;  %v2384_v2 = vmax.f32 %v2376_v37, 0.0 }
 0x500   : > { %2394 = vst [vmem:[%s406_s15 + $0x38] sm:$0xff] %v2386_v39 }
 0x501   : > { %2392 = vst [vmem:[%s406_s15 + $0x28] sm:$0xff] %v2384_v2 }
 0x502   : > { %3000 = shalt.err (!%p2997_p3)
}
 0x503   : > { %s3001_s28 = scalar_lea.hbm %s3458_s19, 1024  ;;  %s3005_s18 = scalar_lea.hbm %s3517_s12, 2048 }
 0x504   : > { %p3002_p4 = scmp.ne.s32.totalorder %s3458_s19, %s3001_s28  ;;  %p3006_p9 = scmp.lt.u32.totalorder %s3458_s19, %s3517_s12 }
 0x505   : > { %p3007_p10 = scmp.lt.u32.totalorder %s3005_s18, %s3001_s28  ;;  %p3009_p12 = scmp.lt.u32.totalorder %s3001_s28, %s3458_s19 }
 0x506   : > { %p3003_p7 = pnand %p3002_p4, %p3160_p5 }
 0x507   : > { %p3008_p11 = por %p3007_p10, %p3006_p9 }
 0x508   : > { %p3004_p8 = pneg %p3003_p7 }
 0x509   : > { %p3010_p13 = por %p3009_p12, %p3008_p11 }
 0x50b   : > { %p3011_p0 = pnand %p3010_p13, %p3004_p8 }
 0x50d   : > { %3014 = shalt.err (!%p3011_p0)
}
 0x50e   : > { %s3055_s20 = smov 128   ;;  %s3056_s16 = smov 8  }
 0x50f   : > { %2921 = dma.vmem_to_hbm [thread:$0]  (%p3160_p5), %s3460_s17, 1024, %s3458_s19, %s3464_s25, %s3055_s20, %s3055_s20, %s3056_s16  }
 0x510 PF: > { %p2927_p1 = scmp.ge.s32.totalorder %s3049_s24, 2  ;;  %s2424_s15 = sand.u32 1, %s3037_s21  }
 0x511   : > { %s2425_s28 = scalar_lea.sflag [#allocation5], %s2424_s15 }
 0x512   : > { %p2924_p2 = pnand %p2927_p1, %p3164_p6 }
 0x514   : > { %3032 = dma.done.wait (!%p2924_p2), %s2425_s28, 1024  }
 0x515   : > { %3034 = vsyncadd (!%p2924_p2), %s2425_s28, 4294966272  ;;  %s3521_s30 = sld [smem:[#allocation7_spill]]  ;;  %p22_p3 = scmp.ge.s32.totalorder %s3147_s27, 4  }
 0x516   : > { %s3522_s21 = smov %s3041_s22  ;;  %s3523_s22 = smov %s3045_s23 }
 0x517   : > { %s3525_s24 = smov %s3147_s27  ;;  %24 = sbr.rel (!%p22_p3) target bundleno = 3 (0x3), region = 110 }
 0x51b   : > { %s3524_s23 = smov %s3521_s30 }
 0x51e   :  { %2430 = vsyncpa [#allocation5], 1 }
 0x51f   :  { %2432 = vsyncpa [#allocation5 + $0x1], 1 }

</bundles_post_ra>
